<compile_context>
chip_gen: v7x
topology: tpu7x:2x2x1
jax: 0.10.0
libtpu: 0.0.40
codegen_flags: <defaults>
</compile_context>

<pallas_src>
import functools

import numpy as np
import jax
import jax.numpy as jnp
from jax.experimental import pallas as pl
from jax.experimental.pallas import tpu as pltpu

_INNER_MLP_MULT = 2
_BN_EPS = 1e-5
_ROW_PAD = 128  # pad row count to a full MXU/sublane-friendly multiple


def _round_up(x, m):
    return ((x + m - 1) // m) * m


# ----------------------------------------------------------------------------
# Fused Pallas kernel: stacked composite gather -> concat -> Linear/BN/ReLU x2
# ----------------------------------------------------------------------------
def _edge_edge_kernel(m_ref, x_ref, w1_ref, g1_ref, b1_ref,
                      w2_ref, g2_ref, b2_ref, o_ref, buf_ref, *, n_valid):
    Rp, H = x_ref.shape

    xb = x_ref[...].astype(jnp.bfloat16)                 # single input cast

    # ---- both gather levels in ONE matmul: [PP;PQ;QP;QQ] @ x ----------------
    G = jnp.dot(m_ref[...], xb, preferred_element_type=jnp.float32)   # [4Rp, H]
    Gb = G.astype(jnp.bfloat16)

    # ---- MLP input [x | PP@x | PQ@x | QP@x | QQ@x] in a bf16 buffer ---------
    # (lane-aligned 128-wide slices -> unmasked full-lane stores)
    buf_ref[:, 0 * H:1 * H] = xb
    buf_ref[:, 1 * H:2 * H] = Gb[0 * Rp:1 * Rp]
    buf_ref[:, 2 * H:3 * H] = Gb[1 * Rp:2 * Rp]
    buf_ref[:, 3 * H:4 * H] = Gb[2 * Rp:3 * Rp]
    buf_ref[:, 4 * H:5 * H] = Gb[3 * Rp:4 * Rp]

    inv_n = jnp.float32(1.0 / n_valid)
    row_valid = jax.lax.broadcasted_iota(jnp.int32, (Rp, 1), 0) < n_valid

    # ---- edge_mlp layer 1: Linear(no bias) -> BN(train) -> ReLU -------------
    h = jnp.dot(buf_ref[...], w1_ref[...], preferred_element_type=jnp.float32)
    # padded rows of h are exactly zero here, so sums / true-count are correct
    mu1 = jnp.sum(h, axis=0, keepdims=True) * inv_n
    var1 = jnp.maximum(
        jnp.sum(h * h, axis=0, keepdims=True) * inv_n - mu1 * mu1, 0.0)
    h = (h - mu1) * jax.lax.rsqrt(var1 + _BN_EPS) * g1_ref[...] + b1_ref[...]
    # ReLU + zero padded rows so they do not pollute the second BatchNorm
    h = jnp.where(row_valid, jnp.maximum(h, 0.0), 0.0)

    # ---- layer 2: Linear(no bias) -> BN(train) -> ReLU ----------------------
    y = jnp.dot(h.astype(jnp.bfloat16), w2_ref[...],
                preferred_element_type=jnp.float32)
    mu2 = jnp.sum(y, axis=0, keepdims=True) * inv_n
    var2 = jnp.maximum(
        jnp.sum(y * y, axis=0, keepdims=True) * inv_n - mu2 * mu2, 0.0)
    y = (y - mu2) * jax.lax.rsqrt(var2 + _BN_EPS) * g2_ref[...] + b2_ref[...]
    o_ref[...] = jnp.maximum(y, 0.0)


def edge_edge_forward(edge_rep, mstack, params):
    """Fused Edge_edge forward.

    edge_rep : [R, H] f32   (R = 2 * num_edges, 2 atoms per edge)
    mstack   : [4*Rp, Rp] bf16  stacked, row-padded composite transfer maps
    returns  : [R, H] f32
    """
    R, H = edge_rep.shape
    Rp = mstack.shape[1]
    assert mstack.shape[0] == 4 * Rp and Rp >= R

    w1, g1, b1, w2, g2, b2 = params["edge_mlp"]
    Dm = w1.shape[1]
    Dout = w2.shape[1]

    # zero-pad rows; BN stats inside the kernel use the true row count R
    x_pad = jnp.zeros((Rp, H), jnp.float32).at[:R].set(edge_rep.astype(jnp.float32))

    vmem = lambda: pl.BlockSpec(memory_space=pltpu.MemorySpace.VMEM)

    # explicit VMEM budget from the actual operand + scratch footprint (+headroom)
    footprint = (mstack.size * 2 + x_pad.size * 4          # gather map, activations
                 + w1.size * 2 + w2.size * 2                # bf16 weights
                 + 2 * (Dm + Dout) * 4                      # BN affine params
                 + Rp * Dout * 4                            # f32 output
                 + Rp * 5 * H * 2)                          # bf16 MLP-input scratch
    vmem_limit = int(min(max(4 * footprint, 4 << 20), 32 << 20))

    out = pl.pallas_call(
        functools.partial(_edge_edge_kernel, n_valid=R),
        out_shape=jax.ShapeDtypeStruct((Rp, Dout), jnp.float32),
        in_specs=[vmem() for _ in range(8)],
        out_specs=vmem(),
        scratch_shapes=[pltpu.VMEM((Rp, 5 * H), jnp.bfloat16)],
        compiler_params=pltpu.CompilerParams(vmem_limit_bytes=vmem_limit),
        # TODO(synk): for large graphs, tile rows (parallel grid axis -> v7x dual
        # TensorCore) and switch BN to per-tile partial sums + finalize pass.
    )(mstack, x_pad,
      w1, g1.reshape(1, Dm), b1.reshape(1, Dm),
      w2, g2.reshape(1, Dout), b2.reshape(1, Dout))
    return out[:R]


# ----------------------------------------------------------------------------
# Host-side graph glue: order-1 -> order-1 transfer maps and their composites
# ----------------------------------------------------------------------------
def _offsets(subgraphs):
    offs, n = [], 0
    for sg in subgraphs:
        offs.append(n)
        n += len(sg)
    return offs, n


def build_transfer(src_subgraphs, tgt_subgraphs):
    """P (local-copy map) and Q (sum-over-intersection map), [tgt_rows, src_rows]."""
    s_off, n_src = _offsets(src_subgraphs)
    t_off, n_tgt = _offsets(tgt_subgraphs)
    P = np.zeros((n_tgt, n_src), np.float32)
    Q = np.zeros((n_tgt, n_src), np.float32)
    for ti, T in enumerate(tgt_subgraphs):
        for si, S in enumerate(src_subgraphs):
            inter = [a for a in T if a in S]
            if not inter:
                continue
            for a in inter:
                tr = t_off[ti] + T.index(a)
                P[tr, s_off[si] + S.index(a)] += 1.0
                for b in inter:
                    Q[tr, s_off[si] + S.index(b)] += 1.0
    return P, Q


def build_gather_stack(P, Q, row_pad=_ROW_PAD):
    """Second-level composite transfer maps [PP;PQ;QP;QQ], stacked & row-padded.

    gather(gather(x)) only ever enters the MLP, so the two gather levels collapse
    into these four static composites, computed once on the host. Entries are
    small integer overlap counts -> exact in bf16.
    """
    R = P.shape[0]
    Rp = _round_up(max(R, 1), row_pad)
    comps = (P @ P, P @ Q, Q @ P, Q @ Q)      # channel block order of the MLP input
    M = np.zeros((4 * Rp, Rp), np.float32)
    for k, C in enumerate(comps):
        M[k * Rp:k * Rp + R, :R] = C
    return jnp.asarray(M, jnp.bfloat16), Rp


# ----------------------------------------------------------------------------
# Parameters
# ----------------------------------------------------------------------------
def init_params(hidden_dim, key):
    H = hidden_dim
    Dm = H * _INNER_MLP_MULT
    k1, k2 = jax.random.split(key, 2)

    def lin(k, din, dout):
        # Linear weights pre-cast to bf16 (MXU operands); BN affine stays f32.
        w = jax.random.normal(k, (din, dout), jnp.float32) / np.sqrt(din)
        return w.astype(jnp.bfloat16)

    return {
        "edge_mlp": (
            lin(k1, 5 * H, Dm),
            jnp.ones((Dm,), jnp.float32), jnp.zeros((Dm,), jnp.float32),
            lin(k2, Dm, H),
            jnp.ones((H,), jnp.float32), jnp.zeros((H,), jnp.float32),
        ),
        # present in the module but unused in forward
        "epsilon1": jnp.float32(0.0),
        "epsilon2": jnp.float32(0.0),
    }


# ----------------------------------------------------------------------------
# Demo
# ----------------------------------------------------------------------------
if __name__ == "__main__":
    # Lane-dense hidden width (multiple of 128) so every channel dimension
    # (H, 4H, 5H, 2*mult*H) maps to full 128-lane vregs.
    H = 128

    # Small deterministic graph: a 5-ring fused with a 6-ring sharing vertex 0/4.
    edges = [(0, 1), (1, 2), (2, 3), (3, 4), (0, 4),
             (4, 5), (5, 6), (6, 7), (7, 8), (0, 8)]
    edge_sgs = [list(e) for e in edges]

    # edge-layer -> edge-layer transfer maps and their stacked composites
    P, Q = build_transfer(edge_sgs, edge_sgs)
    mstack, _ = build_gather_stack(P, Q)

    n_edge_rows = 2 * len(edges)                     # 20 (2 atoms per edge)

    key = jax.random.PRNGKey(0)
    k_e, k_p = jax.random.split(key, 2)
    edge_rep = jax.random.normal(k_e, (n_edge_rows, H), jnp.float32)
    params = init_params(H, k_p)

    edge_out = edge_edge_forward(edge_rep, mstack, params)
    jax.block_until_ready(edge_out)

    assert edge_out.shape == (n_edge_rows, H)
    assert bool(jnp.all(jnp.isfinite(edge_out)))
    print("KERNEL_OK")
</pallas_src>

<mosaic_0001>
module attributes {stable_mosaic.version = 11 : i64} {
  func.func @_edge_edge_kernel(%arg0: memref<512x128xbf16, #tpu.memory_space<vmem>>, %arg1: memref<128x128xf32, #tpu.memory_space<vmem>>, %arg2: memref<640x256xbf16, #tpu.memory_space<vmem>>, %arg3: memref<1x256xf32, #tpu.memory_space<vmem>>, %arg4: memref<1x256xf32, #tpu.memory_space<vmem>>, %arg5: memref<256x128xbf16, #tpu.memory_space<vmem>>, %arg6: memref<1x128xf32, #tpu.memory_space<vmem>>, %arg7: memref<1x128xf32, #tpu.memory_space<vmem>>, %arg8: memref<128x128xf32, #tpu.memory_space<vmem>>, %arg9: memref<128x640xbf16, #tpu.memory_space<vmem>>) attributes {dimension_semantics = [], scalar_prefetch = 0 : i64, scratch_operands = 1 : i64, tpu.core_type = #tpu.core_type<tc>} {
    %c0 = arith.constant 0 : index
    %c0_0 = arith.constant 0 : index
    %0 = vector.load %arg1[%c0, %c0_0] : memref<128x128xf32, #tpu.memory_space<vmem>>, vector<128x128xf32>
    %1 = arith.truncf %0 : vector<128x128xf32> to vector<128x128xbf16>
    %c0_1 = arith.constant 0 : index
    %c0_2 = arith.constant 0 : index
    %2 = vector.load %arg0[%c0_1, %c0_2] : memref<512x128xbf16, #tpu.memory_space<vmem>>, vector<512x128xbf16>
    %cst = arith.constant dense<0.000000e+00> : vector<512x128xf32>
    %3 = tpu.matmul %2, %1, %cst {dimension_numbers = #tpu.dot_dimension_numbers<[1], [0], [0], [1], [0, 0, 1, 1], [], []>} : vector<512x128xbf16>, vector<128x128xbf16>, vector<512x128xf32> -> vector<512x128xf32>
    %4 = arith.truncf %3 : vector<512x128xf32> to vector<512x128xbf16>
    %c0_3 = arith.constant 0 : index
    %c0_4 = arith.constant 0 : index
    %5 = vector.load %arg9[%c0_3, %c0_4] : memref<128x640xbf16, #tpu.memory_space<vmem>>, vector<128x128xbf16>
    tpu.vector_store %arg9[%c0_3, %c0_4], %1 {strides = array<i32>} : memref<128x640xbf16, #tpu.memory_space<vmem>>, vector<128x128xbf16>,
    %6 = vector.extract_strided_slice %4 {offsets = [0, 0], sizes = [128, 128], strides = [1, 1]} : vector<512x128xbf16> to vector<128x128xbf16>
    %c0_5 = arith.constant 0 : index
    %c128 = arith.constant 128 : index
    %7 = vector.load %arg9[%c0_5, %c128] : memref<128x640xbf16, #tpu.memory_space<vmem>>, vector<128x128xbf16>
    tpu.vector_store %arg9[%c0_5, %c128], %6 {strides = array<i32>} : memref<128x640xbf16, #tpu.memory_space<vmem>>, vector<128x128xbf16>,
    %8 = vector.extract_strided_slice %4 {offsets = [128, 0], sizes = [128, 128], strides = [1, 1]} : vector<512x128xbf16> to vector<128x128xbf16>
    %c0_6 = arith.constant 0 : index
    %c256 = arith.constant 256 : index
    %9 = vector.load %arg9[%c0_6, %c256] : memref<128x640xbf16, #tpu.memory_space<vmem>>, vector<128x128xbf16>
    tpu.vector_store %arg9[%c0_6, %c256], %8 {strides = array<i32>} : memref<128x640xbf16, #tpu.memory_space<vmem>>, vector<128x128xbf16>,
    %10 = vector.extract_strided_slice %4 {offsets = [256, 0], sizes = [128, 128], strides = [1, 1]} : vector<512x128xbf16> to vector<128x128xbf16>
    %c0_7 = arith.constant 0 : index
    %c384 = arith.constant 384 : index
    %11 = vector.load %arg9[%c0_7, %c384] : memref<128x640xbf16, #tpu.memory_space<vmem>>, vector<128x128xbf16>
    tpu.vector_store %arg9[%c0_7, %c384], %10 {strides = array<i32>} : memref<128x640xbf16, #tpu.memory_space<vmem>>, vector<128x128xbf16>,
    %12 = vector.extract_strided_slice %4 {offsets = [384, 0], sizes = [128, 128], strides = [1, 1]} : vector<512x128xbf16> to vector<128x128xbf16>
    %c0_8 = arith.constant 0 : index
    %c512 = arith.constant 512 : index
    %13 = vector.load %arg9[%c0_8, %c512] : memref<128x640xbf16, #tpu.memory_space<vmem>>, vector<128x128xbf16>
    tpu.vector_store %arg9[%c0_8, %c512], %12 {strides = array<i32>} : memref<128x640xbf16, #tpu.memory_space<vmem>>, vector<128x128xbf16>,
    %14 = tpu.iota {dimensions = array<i32: 0>} : vector<128x1xi32>
    %c20_i32 = arith.constant 20 : i32
    %15 = vector.broadcast %c20_i32 : i32 to vector<128x1xi32>
    %16 = arith.cmpi slt, %14, %15 : vector<128x1xi32>
    %c0_9 = arith.constant 0 : index
    %c0_10 = arith.constant 0 : index
    %17 = vector.load %arg9[%c0_9, %c0_10] : memref<128x640xbf16, #tpu.memory_space<vmem>>, vector<128x640xbf16>
    %c0_11 = arith.constant 0 : index
    %c0_12 = arith.constant 0 : index
    %18 = vector.load %arg2[%c0_11, %c0_12] : memref<640x256xbf16, #tpu.memory_space<vmem>>, vector<640x256xbf16>
    %cst_13 = arith.constant dense<0.000000e+00> : vector<128x256xf32>
    %19 = tpu.matmul %17, %18, %cst_13 {dimension_numbers = #tpu.dot_dimension_numbers<[1], [0], [0], [1], [0, 0, 1, 1], [], []>} : vector<128x640xbf16>, vector<640x256xbf16>, vector<128x256xf32> -> vector<128x256xf32>
    %cst_14 = arith.constant dense<0.000000e+00> : vector<256xf32>
    %20 = vector.multi_reduction <add>, %19, %cst_14 [0] : vector<128x256xf32> to vector<256xf32>
    %21 = vector.shape_cast %20 : vector<256xf32> to vector<1x256xf32>
    %cst_15 = arith.constant 5.000000e-02 : f32
    %22 = vector.broadcast %cst_15 : f32 to vector<1x256xf32>
    %23 = arith.mulf %21, %22 : vector<1x256xf32>
    %24 = arith.mulf %19, %19 : vector<128x256xf32>
    %cst_16 = arith.constant dense<0.000000e+00> : vector<256xf32>
    %25 = vector.multi_reduction <add>, %24, %cst_16 [0] : vector<128x256xf32> to vector<256xf32>
    %26 = vector.shape_cast %25 : vector<256xf32> to vector<1x256xf32>
    %cst_17 = arith.constant 5.000000e-02 : f32
    %27 = vector.broadcast %cst_17 : f32 to vector<1x256xf32>
    %28 = arith.mulf %26, %27 : vector<1x256xf32>
    %29 = arith.mulf %23, %23 : vector<1x256xf32>
    %30 = arith.subf %28, %29 : vector<1x256xf32>
    %cst_18 = arith.constant 0.000000e+00 : f32
    %31 = vector.broadcast %cst_18 : f32 to vector<1x256xf32>
    %32 = arith.maximumf %30, %31 : vector<1x256xf32>
    %33 = vector.broadcast %23 : vector<1x256xf32> to vector<128x256xf32>
    %34 = arith.subf %19, %33 : vector<128x256xf32>
    %cst_19 = arith.constant 9.99999974E-6 : f32
    %35 = vector.broadcast %cst_19 : f32 to vector<1x256xf32>
    %36 = arith.addf %32, %35 : vector<1x256xf32>
    %37 = math.rsqrt %36 : vector<1x256xf32>
    %38 = vector.broadcast %37 : vector<1x256xf32> to vector<128x256xf32>
    %39 = arith.mulf %34, %38 : vector<128x256xf32>
    %c0_20 = arith.constant 0 : index
    %c0_21 = arith.constant 0 : index
    %40 = vector.load %arg3[%c0_20, %c0_21] : memref<1x256xf32, #tpu.memory_space<vmem>>, vector<1x256xf32>
    %41 = vector.broadcast %40 : vector<1x256xf32> to vector<128x256xf32>
    %42 = arith.mulf %39, %41 : vector<128x256xf32>
    %c0_22 = arith.constant 0 : index
    %c0_23 = arith.constant 0 : index
    %43 = vector.load %arg4[%c0_22, %c0_23] : memref<1x256xf32, #tpu.memory_space<vmem>>, vector<1x256xf32>
    %44 = vector.broadcast %43 : vector<1x256xf32> to vector<128x256xf32>
    %45 = arith.addf %42, %44 : vector<128x256xf32>
    %cst_24 = arith.constant 0.000000e+00 : f32
    %46 = vector.broadcast %cst_24 : f32 to vector<128x256xf32>
    %47 = arith.maximumf %45, %46 : vector<128x256xf32>
    %cst_25 = arith.constant 0.000000e+00 : f32
    %48 = vector.shape_cast %16 : vector<128x1xi1> to vector<128x1xi1>
    %49 = vector.broadcast %48 : vector<128x1xi1> to vector<128x256xi1>
    %50 = vector.broadcast %cst_25 : f32 to vector<128x256xf32>
    %51 = arith.select %49, %47, %50 : vector<128x256xi1>, vector<128x256xf32>
    %52 = arith.truncf %51 : vector<128x256xf32> to vector<128x256xbf16>
    %c0_26 = arith.constant 0 : index
    %c0_27 = arith.constant 0 : index
    %53 = vector.load %arg5[%c0_26, %c0_27] : memref<256x128xbf16, #tpu.memory_space<vmem>>, vector<256x128xbf16>
    %cst_28 = arith.constant dense<0.000000e+00> : vector<128x128xf32>
    %54 = tpu.matmul %52, %53, %cst_28 {dimension_numbers = #tpu.dot_dimension_numbers<[1], [0], [0], [1], [0, 0, 1, 1], [], []>} : vector<128x256xbf16>, vector<256x128xbf16>, vector<128x128xf32> -> vector<128x128xf32>
    %cst_29 = arith.constant dense<0.000000e+00> : vector<128xf32>
    %55 = vector.multi_reduction <add>, %54, %cst_29 [0] : vector<128x128xf32> to vector<128xf32>
    %56 = vector.shape_cast %55 : vector<128xf32> to vector<1x128xf32>
    %cst_30 = arith.constant 5.000000e-02 : f32
    %57 = vector.broadcast %cst_30 : f32 to vector<1x128xf32>
    %58 = arith.mulf %56, %57 : vector<1x128xf32>
    %59 = arith.mulf %54, %54 : vector<128x128xf32>
    %cst_31 = arith.constant dense<0.000000e+00> : vector<128xf32>
    %60 = vector.multi_reduction <add>, %59, %cst_31 [0] : vector<128x128xf32> to vector<128xf32>
    %61 = vector.shape_cast %60 : vector<128xf32> to vector<1x128xf32>
    %cst_32 = arith.constant 5.000000e-02 : f32
    %62 = vector.broadcast %cst_32 : f32 to vector<1x128xf32>
    %63 = arith.mulf %61, %62 : vector<1x128xf32>
    %64 = arith.mulf %58, %58 : vector<1x128xf32>
    %65 = arith.subf %63, %64 : vector<1x128xf32>
    %cst_33 = arith.constant 0.000000e+00 : f32
    %66 = vector.broadcast %cst_33 : f32 to vector<1x128xf32>
    %67 = arith.maximumf %65, %66 : vector<1x128xf32>
    %68 = vector.broadcast %58 : vector<1x128xf32> to vector<128x128xf32>
    %69 = arith.subf %54, %68 : vector<128x128xf32>
    %cst_34 = arith.constant 9.99999974E-6 : f32
    %70 = vector.broadcast %cst_34 : f32 to vector<1x128xf32>
    %71 = arith.addf %67, %70 : vector<1x128xf32>
    %72 = math.rsqrt %71 : vector<1x128xf32>
    %73 = vector.broadcast %72 : vector<1x128xf32> to vector<128x128xf32>
    %74 = arith.mulf %69, %73 : vector<128x128xf32>
    %c0_35 = arith.constant 0 : index
    %c0_36 = arith.constant 0 : index
    %75 = vector.load %arg6[%c0_35, %c0_36] : memref<1x128xf32, #tpu.memory_space<vmem>>, vector<1x128xf32>
    %76 = vector.broadcast %75 : vector<1x128xf32> to vector<128x128xf32>
    %77 = arith.mulf %74, %76 : vector<128x128xf32>
    %c0_37 = arith.constant 0 : index
    %c0_38 = arith.constant 0 : index
    %78 = vector.load %arg7[%c0_37, %c0_38] : memref<1x128xf32, #tpu.memory_space<vmem>>, vector<1x128xf32>
    %79 = vector.broadcast %78 : vector<1x128xf32> to vector<128x128xf32>
    %80 = arith.addf %77, %79 : vector<128x128xf32>
    %cst_39 = arith.constant 0.000000e+00 : f32
    %81 = vector.broadcast %cst_39 : f32 to vector<128x128xf32>
    %82 = arith.maximumf %80, %81 : vector<128x128xf32>
    %c0_40 = arith.constant 0 : index
    %c0_41 = arith.constant 0 : index
    %83 = vector.load %arg8[%c0_40, %c0_41] : memref<128x128xf32, #tpu.memory_space<vmem>>, vector<128x128xf32>
    tpu.vector_store %arg8[%c0_40, %c0_41], %82 {strides = array<i32>} : memref<128x128xf32, #tpu.memory_space<vmem>>, vector<128x128xf32>,
    return
  }
}

</mosaic_0001>

<bundles_post_ra>
// kernel: tpu_custom_call.1
= control target key start
LH: loop header
LB: loop body
LE: loop exit
PB: predicated region body
PF: predicated region fallthrough
CT: control target
= control target key end

     0   :  { %13 = vsyncpa [#allocation4], 0  ;;  %s3514_s0 = inlined_call_operand.hbm [shape: bf16[512,128], index: 0, kind: input, shape index: {}]   ;;  %s3515_s1 = inlined_call_operand.hbm [shape: f32[128,128], index: 1, kind: input, shape index: {}]   ;;  %s3516_s2 = inlined_call_operand.hbm [shape: bf16[640,256], index: 2, kind: input, shape index: {}]   ;;  %s3517_s3 = inlined_call_operand.vmem [shape: f32[1,256], index: 3, kind: input, shape index: {}]   ;;  %s3518_s4 = inlined_call_operand.vmem [shape: f32[1,256], index: 4, kind: input, shape index: {}]   ;;  %s3519_s5 = inlined_call_operand.hbm [shape: bf16[256,128], index: 5, kind: input, shape index: {}]   ;;  %s3520_s6 = inlined_call_operand.vmem [shape: f32[1,128], index: 6, kind: input, shape index: {}]   ;;  %s3521_s7 = inlined_call_operand.vmem [shape: f32[1,128], index: 7, kind: input, shape index: {}]   ;;  %s3522_s8 = inlined_call_operand.hbm [shape: f32[128,128], index: 8, kind: output, shape index: {}]  }
   0x1   :  { %14 = vsyncpa [#allocation7], 0 }
   0x2   :  { %15 = vsyncpa [#allocation10], 0 }
   0x3   :  { %16 = vsyncpa [#allocation5], 0  ;;  %s3121_s27 = smov [#allocation6]   ;;  %s3003_s9 = scalar_lea.hbm %s3515_s1, 2048 }
   0x4   :  { %s34_s28 = sshll.u32 %s3121_s27, 4  ;;  %p3004_p0 = scmp.ne.s32.totalorder %s3515_s1, %s3003_s9  ;;  %s35_s28 = int_to_ptr.vmem [resolvable:$true] %s34_s28 }
   0x5   :  { %p3007_p1 = scmp.lt.u32.totalorder %s3003_s9, %s3515_s1 }
   0x7   :  { %p3009_p2 = pnand %p3007_p1, %p3004_p0 }
   0x9   :  { %3012 = shalt.err (!%p3009_p2)
}
   0xa   :  { %s3013_s14 = scalar_lea.vmem %s35_s28, 2048  ;;  %p3018_p4 = scmp.lt.s32.totalorder %s35_s28, %s35_s28 }
   0xb   :  { %p3014_p3 = scmp.ne.s32.totalorder %s35_s28, %s3013_s14  ;;  %p3019_p5 = scmp.lt.s32.totalorder %s3013_s14, %s3013_s14 }
   0xd   :  { %p3020_p6 = por %p3019_p5, %p3018_p4 }
   0xf   :  { %p3021_p7 = pnand %p3020_p6, %p3014_p3 }
  0x11   :  { %3024 = shalt.err (!%p3021_p7)
}
  0x12   :  { %s3122_s15 = smov 128   ;;  %s3123_s16 = smov 8  }
  0x13   :  { %40 = dma.hbm_to_vmem [thread:$0]  %s3515_s1, 2048, %s35_s28, [#allocation7], %s3122_s15, %s3122_s15, %s3123_s16  }
  0x14   :  { %s3124_s19 = smov [#allocation3]   ;;  %s3025_s23 = scalar_lea.hbm %s3514_s0, 4096 }
  0x15   :  { %s22_s20 = sshll.u32 %s3124_s19, 4  ;;  %p3026_p8 = scmp.ne.s32.totalorder %s3514_s0, %s3025_s23  ;;  %s23_s20 = int_to_ptr.vmem [resolvable:$true] %s22_s20 }
  0x16   :  { %p3029_p9 = scmp.lt.u32.totalorder %s3025_s23, %s3514_s0 }
  0x18   :  { %p3031_p10 = pnand %p3029_p9, %p3026_p8 }
  0x1a   :  { %3034 = shalt.err (!%p3031_p10)
}
  0x1b   :  { %s3035_s29 = scalar_lea.vmem %s23_s20, 4096  ;;  %p3040_p12 = scmp.lt.s32.totalorder %s23_s20, %s23_s20 }
  0x1c   :  { %p3036_p11 = scmp.ne.s32.totalorder %s23_s20, %s3035_s29  ;;  %p3041_p13 = scmp.lt.s32.totalorder %s3035_s29, %s3035_s29 }
  0x1e   :  { %p3042_p0 = por %p3041_p13, %p3040_p12 }
  0x20   :  { %p3043_p1 = pnand %p3042_p0, %p3036_p11 }
  0x22   :  { %3046 = shalt.err (!%p3043_p1)
}
  0x23   :  { %s3125_s1 = smov 64   ;;  %s3126_s28 = smov 4  }
  0x24   :  { %28 = dma.hbm_to_vmem [thread:$0]  %s3514_s0, 4096, %s23_s20, [#allocation4], %s3125_s1, %s3125_s1, %s3126_s28  }
  0x25   :  { %s3127_s10 = smov [#allocation8]   ;;  %s3128_s12 = smov [#allocation9]  }
  0x26   :  { %s46_s11 = sshll.u32 %s3127_s10, 4  ;;  %s62_s13 = sshll.u32 %s3128_s12, 4  ;;  %s47_s11 = int_to_ptr.vmem [resolvable:$true] %s46_s11  ;;  %s3209_s13 = int_to_ptr.vmem [resolvable:$true] %s62_s13 }
  0x27   :  { %s3047_s18 = scalar_lea.hbm %s3516_s2, 10240 }
  0x28   :  { %p3048_p2 = scmp.ne.s32.totalorder %s3516_s2, %s3047_s18  ;;  %p3051_p3 = scmp.lt.u32.totalorder %s3047_s18, %s3516_s2 }
  0x2a   :  { %p3053_p4 = pnand %p3051_p3, %p3048_p2 }
  0x2c   :  { %3056 = shalt.err (!%p3053_p4)
}
  0x2d   :  { %s3057_s0 = scalar_lea.vmem %s47_s11, 10240  ;;  %p3062_p6 = scmp.lt.s32.totalorder %s47_s11, %s47_s11 }
  0x2e   :  { %p3058_p5 = scmp.ne.s32.totalorder %s47_s11, %s3057_s0  ;;  %p3063_p7 = scmp.lt.s32.totalorder %s3057_s0, %s3057_s0 }
  0x30   :  { %p3064_p8 = por %p3063_p7, %p3062_p6 }
  0x32   :  { %p3065_p9 = pnand %p3064_p8, %p3058_p5 }
  0x34   :  { %3068 = shalt.err (!%p3065_p9)
}
  0x35   :  { %52 = dma.hbm_to_vmem [thread:$0]  %s3516_s2, 10240, %s47_s11, [#allocation7], %s3122_s15, %s3122_s15, %s3123_s16  }
  0x36   :  { %s3069_s27 = scalar_lea.hbm %s3519_s5, 2048 }
  0x37   :  { %p3070_p10 = scmp.ne.s32.totalorder %s3519_s5, %s3069_s27  ;;  %p3073_p11 = scmp.lt.u32.totalorder %s3069_s27, %s3519_s5 }
  0x39   :  { %p3075_p12 = pnand %p3073_p11, %p3070_p10 }
  0x3b   :  { %3078 = shalt.err (!%p3075_p12)
}
  0x3c   :  { %s3079_s12 = scalar_lea.vmem %s3209_s13, 2048  ;;  %p3084_p0 = scmp.lt.s32.totalorder %s3209_s13, %s3209_s13 }
  0x3d   :  { %p3080_p13 = scmp.ne.s32.totalorder %s3209_s13, %s3079_s12  ;;  %p3085_p1 = scmp.lt.s32.totalorder %s3079_s12, %s3079_s12 }
  0x3f   :  { %p3086_p2 = por %p3085_p1, %p3084_p0 }
  0x41   :  { %p3087_p3 = pnand %p3086_p2, %p3080_p13 }
  0x43   :  { %3090 = shalt.err (!%p3087_p3)
}
  0x44   :  { %68 = dma.hbm_to_vmem [thread:$0]  %s3519_s5, 2048, %s3209_s13, [#allocation10], %s3125_s1, %s3125_s1, %s3126_s28  }
  0x45   :  { %3113 = dma.done.wait [#allocation4], 4096  }
  0x46   :  { %3114 = vsyncadd [#allocation4], 4294963200 }
  0x47   :  { %3115 = dma.done.wait [#allocation7], 12288  }
  0x48   :  { %3116 = vsyncadd [#allocation7], 4294955008 }
  0x49   :  { %3117 = dma.done.wait [#allocation10], 2048  }
  0x4a   :  { %3118 = vsyncadd [#allocation10], 4294965248  ;;  %v86_v0 = vld [vmem:[#allocation6] sm:$0xff]  ;;  %v87_v1 = vld [vmem:[#allocation6 + $0x8] sm:$0xff]  ;;  %vm3130_vm1 = vmmov 1  }
  0x4b   :  { %v88_v2 = vld [vmem:[#allocation6 + $0x10] sm:$0xff]  ;;  %v3246_v3 = vpack.c.bf16 %v87_v1, %v86_v0  ;;  %v89_v4 = vld [vmem:[#allocation6 + $0x18] sm:$0xff]  ;;  %v90_v6 = vld [vmem:[#allocation6 + $0x20] sm:$0xff] }
  0x4c   :  { %v3248_v5 = vpack.c.bf16 %v89_v4, %v88_v2  ;;  %v91_v7 = vld [vmem:[#allocation6 + $0x28] sm:$0xff]  ;;  %v92_v8 = vld [vmem:[#allocation6 + $0x30] sm:$0xff]  ;;  %v93_v10 = vld [vmem:[#allocation6 + $0x38] sm:$0xff] }
  0x4d   :  { %2672 = vmatprep.subr.bf16.mxu0 %v3246_v3  ;;  %v3253_v9 = vpack.c.bf16 %v91_v7, %v90_v6  ;;  %v2829_v11 = vld [vmem:[#allocation3] sm:$0xff]   ;;  %v3257_v12 = vpack.c.bf16 %v93_v10, %v92_v8  ;;  %v95_v14 = vld [vmem:[#allocation6 + $0x48] sm:$0xff]  ;;  %v96_v16 = vld [vmem:[#allocation6 + $0x50] sm:$0xff] }
  0x4e   :  { %2673 = vmatpush3.bf16.msra.mxu0 %v3246_v3  ;;  %2688 = vmatprep.mubr.bf16.mxu0 %v2829_v11  ;;  %v94_v13 = vld [vmem:[#allocation6 + $0x40] sm:$0xff]  ;;  %v97_v17 = vld [vmem:[#allocation6 + $0x58] sm:$0xff]  ;;  %v99_v20 = vld [vmem:[#allocation6 + $0x68] sm:$0xff] }
  0x4f   :  { %2674 = vmatprep.subr.bf16.mxu0 %v3248_v5  ;;  %v3261_v15 = vpack.c.bf16 %v95_v14, %v94_v13  ;;  %v3265_v18 = vpack.c.bf16 %v97_v17, %v96_v16  ;;  %v98_v19 = vld [vmem:[#allocation6 + $0x60] sm:$0xff]  ;;  %v100_v22 = vld [vmem:[#allocation6 + $0x70] sm:$0xff]  ;;  %v101_v23 = vld [vmem:[#allocation6 + $0x78] sm:$0xff] }
  0x50   :  { %v3269_v21 = vpack.c.bf16 %v99_v20, %v98_v19  ;;  %v3273_v24 = vpack.c.bf16 %v101_v23, %v100_v22  ;;  %v2830_v25 = vld [vmem:[#allocation3 + $0x8] sm:$0xff]   ;;  %v2831_v26 = vld [vmem:[#allocation3 + $0x10] sm:$0xff]   ;;  %v2832_v32 = vld [vmem:[#allocation3 + $0x18] sm:$0xff]  }
  0x51   :  { %v2857_v27 = vld [vmem:[#allocation8 + $0x4] ss:$8 sps:$4 sm:$0xff]   ;;  %v2859_v28 = vld [vmem:[#allocation8] ss:$8 sps:$4 sm:$0xff]   ;;  %v2861_v29 = vld [vmem:[#allocation8 + $0x14] ss:$8 sps:$4 sm:$0xff]  }
  0x52   :  { %2675 = vmatpush3.bf16.msra.mxu0 %v3248_v5  ;;  %1280 = vmatprep.subr.bf16.mxu1 %v2857_v27  ;;  %v2864_v30 = vld [vmem:[#allocation8 + $0x10] ss:$8 sps:$4 sm:$0xff]   ;;  %v2865_v31 = vld [vmem:[#allocation8 + $0x24] ss:$8 sps:$4 sm:$0xff]   ;;  %v2867_v34 = vld [vmem:[#allocation8 + $0x20] ss:$8 sps:$4 sm:$0xff]  }
  0x53   :  { %2676 = vmatprep.subr.bf16.mxu0 %v3253_v9  ;;  %1281 = vmatpush1.bf16.msra.mxu1 %v2859_v28  ;;  %v2833_v33 = vld [vmem:[#allocation3 + $0x20] sm:$0xff]   ;;  %v2868_v35 = vld [vmem:[#allocation8 + $0x34] ss:$8 sps:$4 sm:$0xff]   ;;  %v2870_v36 = vld [vmem:[#allocation8 + $0x30] ss:$8 sps:$4 sm:$0xff]  }
  0x54   :  { %1282 = vmatprep.subr.bf16.mxu1 %v2861_v29  ;;  %v2871_v37 = vld [vmem:[#allocation8 + $0x44] ss:$8 sps:$4 sm:$0xff]   ;;  %v2835_v39 = vld [vmem:[#allocation3 + $0x30] sm:$0xff]   ;;  %v2873_v40 = vld [vmem:[#allocation8 + $0x40] ss:$8 sps:$4 sm:$0xff]  }
  0x55   :  { %v2834_v38 = vld [vmem:[#allocation3 + $0x28] sm:$0xff]   ;;  %v2875_v41 = vld [vmem:[#allocation8 + $0x54] ss:$8 sps:$4 sm:$0xff]   ;;  %v2878_v42 = vld [vmem:[#allocation8 + $0x50] ss:$8 sps:$4 sm:$0xff]  }
  0x56   :  { %2677 = vmatpush3.bf16.msra.mxu0 %v3253_v9  ;;  %v2879_v43 = vld [vmem:[#allocation8 + $0x64] ss:$8 sps:$4 sm:$0xff]   ;;  %v2836_v44 = vld [vmem:[#allocation3 + $0x38] sm:$0xff]   ;;  %v2881_v46 = vld [vmem:[#allocation8 + $0x60] ss:$8 sps:$4 sm:$0xff]  }
  0x57   :  { %2678 = vmatprep.subr.bf16.mxu0 %v3257_v12  ;;  %1283 = vmatpush1.bf16.msra.mxu1 %v2864_v30  ;;  %v2837_v45 = vld [vmem:[#allocation3 + $0x40] sm:$0xff]   ;;  %v2882_v47 = vld [vmem:[#allocation8 + $0x74] ss:$8 sps:$4 sm:$0xff]   ;;  %v2884_v48 = vld [vmem:[#allocation8 + $0x70] ss:$8 sps:$4 sm:$0xff]  }
  0x58   :  { %1284 = vmatprep.subr.bf16.mxu1 %v2865_v31  ;;  %v2885_v49 = vld [vmem:[#allocation8 + $0x84] ss:$8 sps:$4 sm:$0xff]   ;;  %v2839_v51 = vld [vmem:[#allocation3 + $0x50] sm:$0xff]   ;;  %v2887_v52 = vld [vmem:[#allocation8 + $0x80] ss:$8 sps:$4 sm:$0xff]  }
  0x59   :  { %v2838_v50 = vld [vmem:[#allocation3 + $0x48] sm:$0xff]   ;;  %v2888_v53 = vld [vmem:[#allocation8 + $0x94] ss:$8 sps:$4 sm:$0xff]   ;;  %v2890_v54 = vld [vmem:[#allocation8 + $0x90] ss:$8 sps:$4 sm:$0xff]  }
  0x5a   :  { %2679 = vmatpush3.bf16.msra.mxu0 %v3257_v12  ;;  %v2891_v55 = vld [vmem:[#allocation8 + $0xa4] ss:$8 sps:$4 sm:$0xff]   ;;  %v2840_v56 = vld [vmem:[#allocation3 + $0x58] sm:$0xff]   ;;  %v2893_v58 = vld [vmem:[#allocation8 + $0xa0] ss:$8 sps:$4 sm:$0xff]  }
  0x5b   :  { %2680 = vmatprep.subr.bf16.mxu0 %v3261_v15  ;;  %1285 = vmatpush1.bf16.msra.mxu1 %v2867_v34  ;;  %v2841_v57 = vld [vmem:[#allocation3 + $0x60] sm:$0xff]   ;;  %v2894_v59 = vld [vmem:[#allocation8 + $0xb4] ss:$8 sps:$4 sm:$0xff]   ;;  %v2896_v60 = vld [vmem:[#allocation8 + $0xb0] ss:$8 sps:$4 sm:$0xff]  }
  0x5c   :  { %1286 = vmatprep.subr.bf16.mxu1 %v2868_v35  ;;  %v2897_v61 = vld [vmem:[#allocation8 + $0xc4] ss:$8 sps:$4 sm:$0xff]   ;;  %v2843_v63 = vld [vmem:[#allocation3 + $0x70] sm:$0xff]   ;;  %v2899_v0 = vld [vmem:[#allocation8 + $0xc0] ss:$8 sps:$4 sm:$0xff]  }
  0x5d   :  { %v2842_v62 = vld [vmem:[#allocation3 + $0x68] sm:$0xff]   ;;  %v2900_v1 = vld [vmem:[#allocation8 + $0xd4] ss:$8 sps:$4 sm:$0xff]   ;;  %v2902_v2 = vld [vmem:[#allocation8 + $0xd0] ss:$8 sps:$4 sm:$0xff]  }
  0x5e   :  { %2681 = vmatpush3.bf16.msra.mxu0 %v3261_v15  ;;  %v2903_v4 = vld [vmem:[#allocation8 + $0xe4] ss:$8 sps:$4 sm:$0xff]   ;;  %v2844_v6 = vld [vmem:[#allocation3 + $0x78] sm:$0xff]   ;;  %v2905_v8 = vld [vmem:[#allocation8 + $0xe0] ss:$8 sps:$4 sm:$0xff]  }
  0x5f   :  { %2682 = vmatprep.subr.bf16.mxu0 %v3265_v18  ;;  %1287 = vmatpush1.bf16.msra.mxu1 %v2870_v36  ;;  %v2845_v7 = vld [vmem:[#allocation3 + $0x80] sm:$0xff]   ;;  %v2846_v10 = vld [vmem:[#allocation3 + $0x88] sm:$0xff]   ;;  %v2847_v11 = vld [vmem:[#allocation3 + $0x90] sm:$0xff]  }
  0x60   :  { %1288 = vmatprep.subr.bf16.mxu1 %v2871_v37  ;;  %v2848_v13 = vld [vmem:[#allocation3 + $0x98] sm:$0xff]   ;;  %v2849_v14 = vld [vmem:[#allocation3 + $0xa0] sm:$0xff]   ;;  %v2850_v16 = vld [vmem:[#allocation3 + $0xa8] sm:$0xff]  }
  0x61   :  { %v2851_v17 = vld [vmem:[#allocation3 + $0xb0] sm:$0xff]   ;;  %v2852_v19 = vld [vmem:[#allocation3 + $0xb8] sm:$0xff]   ;;  %v2853_v22 = vld [vmem:[#allocation3 + $0xc0] sm:$0xff]  }
  0x62   :  { %2683 = vmatpush3.bf16.msra.mxu0 %v3265_v18  ;;  %v2906_v20 = vld [vmem:[#allocation8 + $0xf4] ss:$8 sps:$4 sm:$0xff]   ;;  %v2908_v23 = vld [vmem:[#allocation8 + $0xf0] ss:$8 sps:$4 sm:$0xff]   ;;  %v2860_v29 = vld [vmem:[#allocation3 + $0xe0] sm:$0xff]  }
  0x63   :  { %2684 = vmatprep.subr.bf16.mxu0 %v3269_v21  ;;  %1289 = vmatpush1.bf16.msra.mxu1 %v2873_v40  ;;  %v2855_v27 = vld [vmem:[#allocation3 + $0xd0] sm:$0xff]   ;;  %v2856_v28 = vld [vmem:[#allocation3 + $0xd8] sm:$0xff]   ;;  %v2863_v30 = vld [vmem:[#allocation3 + $0xe8] sm:$0xff]  }
  0x64   :  { %1290 = vmatprep.subr.bf16.mxu1 %v2875_v41  ;;  %v2874_v31 = vld [vmem:[#allocation3 + $0xf0] sm:$0xff]  }
  0x65   :  { %v2914_v40 = vld [vmem:[#allocation8 + $0x114] ss:$8 sps:$4 sm:$0xff]  }
  0x66   :  { %2685 = vmatpush3.bf16.msra.mxu0 %v3269_v21 }
  0x67   :  { %2686 = vmatprep.subr.bf16.mxu0 %v3273_v24  ;;  %1291 = vmatpush1.bf16.msra.mxu1 %v2878_v42  ;;  %v2912_v42 = vld [vmem:[#allocation8 + $0x110] ss:$8 sps:$4 sm:$0xff]  }
  0x68   :  { %1292 = vmatprep.subr.bf16.mxu1 %v2879_v43 }
  0x6a   :  { %2687 = vmatpush3.bf16.msra.mxu0 %v3273_v24 }
  0x6b   :  { %1293 = vmatpush1.bf16.msra.mxu1 %v2881_v46 }
  0x6c   :  { %1294 = vmatprep.subr.bf16.mxu1 %v2882_v47 }
  0x6d   :  { %2689 = vmatmul.mubr.bf16.vlgmr.msra.gmra.mrb[0].mxu0 %v2830_v25  ;;  %v2911_v25 = vld [vmem:[#allocation8 + $0x104] ss:$8 sps:$4 sm:$0xff]  }
  0x6e   :  { %2692 = vmatprep.mubr.bf16.mxu0 %v2831_v26  ;;  %v2854_v26 = vld [vmem:[#allocation3 + $0xc8] sm:$0xff]  }
  0x6f   :  { %1295 = vmatpush1.bf16.msra.mxu1 %v2884_v48 }
  0x70   :  { %1296 = vmatprep.subr.bf16.mxu1 %v2885_v49  ;;  %v2915_v49 = vld [vmem:[#allocation8 + $0x120] ss:$8 sps:$4 sm:$0xff]  }
  0x73   :  { %1297 = vmatpush1.bf16.msra.mxu1 %v2887_v52 }
  0x74   :  { %1298 = vmatprep.subr.bf16.mxu1 %v2888_v53  ;;  %v2923_v53 = vld [vmem:[#allocation8 + $0x144] ss:$8 sps:$4 sm:$0xff]  }
  0x75   :  { %2693 = vmatmul.mubr.bf16.gmra.mrb[4].mxu0 %v2832_v32  ;;  %v2877_v32 = vld [vmem:[#allocation3 + $0xf8] sm:$0xff]  }
  0x76   :  { %2696 = vmatprep.mubr.bf16.mxu0 %v2833_v33 }
  0x77   :  { %1299 = vmatpush1.bf16.msra.mxu1 %v2890_v54 }
  0x78   :  { %1300 = vmatprep.subr.bf16.mxu1 %v2891_v55 }
  0x7b   :  { %1301 = vmatpush1.bf16.msra.mxu1 %v2893_v58  ;;  %v2921_v58 = vld [vmem:[#allocation8 + $0x140] ss:$8 sps:$4 sm:$0xff]  }
  0x7c   :  { %1302 = vmatprep.subr.bf16.mxu1 %v2894_v59  ;;  %v2926_v59 = vld [vmem:[#allocation8 + $0x154] ss:$8 sps:$4 sm:$0xff]  }
  0x7d   :  { %2697 = vmatmul.mubr.bf16.gmra.mrb[8].mxu0 %v2834_v38 }
  0x7e   :  { %2700 = vmatprep.mubr.bf16.mxu0 %v2835_v39  ;;  %v2909_v39 = vld [vmem:[#allocation8 + $0x100] ss:$8 sps:$4 sm:$0xff]  }
  0x7f   :  { %1303 = vmatpush1.bf16.msra.mxu1 %v2896_v60 }
  0x80   :  { %1304 = vmatprep.subr.bf16.mxu1 %v2897_v61 }
  0x83   :  { %1305 = vmatpush1.bf16.msra.mxu1 %v2899_v0 }
  0x84   :  { %1306 = vmatprep.subr.bf16.mxu1 %v2900_v1 }
  0x85   :  { %2701 = vmatmul.mubr.bf16.gmra.mrb[12].mxu0 %v2836_v44  ;;  %v2917_v44 = vld [vmem:[#allocation8 + $0x124] ss:$8 sps:$4 sm:$0xff]  }
  0x86   :  { %2704 = vmatprep.mubr.bf16.mxu0 %v2837_v45 }
  0x87   :  { %1307 = vmatpush1.bf16.msra.mxu1 %v2902_v2 }
  0x88   :  { %1308 = vmatprep.subr.bf16.mxu1 %v2903_v4  ;;  %v2927_v4 = vld [vmem:[#allocation8 + $0x160] ss:$8 sps:$4 sm:$0xff]  }
  0x8b   :  { %1309 = vmatpush1.bf16.msra.mxu1 %v2905_v8 }
  0x8c   :  { %1310 = vmatprep.subr.bf16.mxu1 %v2906_v20  ;;  %v2936_v20 = vld [vmem:[#allocation8 + $0x190] ss:$8 sps:$4 sm:$0xff]  }
  0x8d   :  { %2705 = vmatmul.mubr.bf16.gmra.mrb[16].mxu0 %v2838_v50  ;;  %v2920_v50 = vld [vmem:[#allocation8 + $0x134] ss:$8 sps:$4 sm:$0xff]  }
  0x8e   :  { %2708 = vmatprep.mubr.bf16.mxu0 %v2839_v51 }
  0x8f   :  { %1311 = vmatpush1.bf16.msra.mxu1 %v2908_v23  ;;  %v2941_v23 = vld [vmem:[#allocation8 + $0x1a4] ss:$8 sps:$4 sm:$0xff]  }
  0x90   :  { %1393 = vmatprep.subr.bf16.mxu1 %v2911_v25 }
  0x95   :  { %2709 = vmatmul.mubr.bf16.gmra.mrb[20].mxu0 %v2840_v56 }
  0x96   :  { %2712 = vmatprep.mubr.bf16.mxu0 %v2841_v57 }
  0x9d   :  { %2713 = vmatmul.mubr.bf16.gmra.mrb[24].mxu0 %v2842_v62  ;;  %v2929_v62 = vld [vmem:[#allocation8 + $0x164] ss:$8 sps:$4 sm:$0xff]  }
  0x9e   :  { %2716 = vmatprep.mubr.bf16.mxu0 %v2843_v63 }
  0xa5   :  { %2717 = vmatmul.mubr.bf16.gmra.mrb[28].mxu0 %v2844_v6  ;;  %v2932_v6 = vld [vmem:[#allocation8 + $0x174] ss:$8 sps:$4 sm:$0xff]  }
  0xa6   :  { %2720 = vmatprep.mubr.bf16.mxu0 %v2845_v7  ;;  %v2930_v7 = vld [vmem:[#allocation8 + $0x170] ss:$8 sps:$4 sm:$0xff]  }
  0xad   :  { %2721 = vmatmul.mubr.bf16.gmra.mrb[32].mxu0 %v2846_v10  ;;  %v2935_v10 = vld [vmem:[#allocation8 + $0x184] ss:$8 sps:$4 sm:$0xff]  }
  0xae   :  { %2724 = vmatprep.mubr.bf16.mxu0 %v2847_v11 }
  0xb5   :  { %2725 = vmatmul.mubr.bf16.gmra.mrb[36].mxu0 %v2848_v13 }
  0xb6   :  { %2728 = vmatprep.mubr.bf16.mxu0 %v2849_v14 }
  0xbd   :  { %2729 = vmatmul.mubr.bf16.gmra.mrb[40].mxu0 %v2850_v16 }
  0xbe   :  { %2732 = vmatprep.mubr.bf16.mxu0 %v2851_v17  ;;  %v2938_v17 = vld [vmem:[#allocation8 + $0x194] ss:$8 sps:$4 sm:$0xff]  }
  0xc5   :  { %2733 = vmatmul.mubr.bf16.gmra.mrb[44].mxu0 %v2852_v19 }
  0xc6   :  { %2736 = vmatprep.mubr.bf16.mxu0 %v2853_v22 }
  0xcd   :  { %2737 = vmatmul.mubr.bf16.gmra.mrb[48].mxu0 %v2854_v26 }
  0xce   :  { %2740 = vmatprep.mubr.bf16.mxu0 %v2855_v27 }
  0xd5   :  { %2741 = vmatmul.mubr.bf16.gmra.mrb[52].mxu0 %v2856_v28 }
  0xd6   :  { %2744 = vmatprep.mubr.bf16.mxu0 %v2860_v29  ;;  %v2944_v29 = vld [vmem:[#allocation8 + $0x1b4] ss:$8 sps:$4 sm:$0xff]  }
  0xdd   :  { %2745 = vmatmul.mubr.bf16.gmra.mrb[56].mxu0 %v2863_v30 }
  0xde   :  { %2748 = vmatprep.mubr.bf16.mxu0 %v2874_v31  ;;  %v2942_v31 = vld [vmem:[#allocation8 + $0x1b0] ss:$8 sps:$4 sm:$0xff]  }
  0xe5   :  { %2749 = vmatmul.mubr.bf16.gmra.mrb[60].mxu0 %v2877_v32 }
 0x140   :  { %v2690_v33 = vpop.f32.mrb[0].mxu0 }
 0x141   :  { %v400_v34 = vpop.f32.mrb[1].mxu0 }
 0x142   :  { %v2691_v35 = vpop.f32.mrb[2].mxu0 }
 0x143   :  { %v656_v36 = vpack.c.bf16 %v2691_v35, %v2690_v33  ;;  %v403_v37 = vpop.f32.mrb[3].mxu0  ;;  %v2947_v33 = vld [vmem:[#allocation8 + $0x1c4] ss:$8 sps:$4 sm:$0xff]  }
 0x144   :  { %v655_v38 = vpack.c.bf16 %v403_v37, %v400_v34 }
 0x146   :  { %1312 = vmatprep.mubr.bf16.mxu1 %v655_v38  ;;  %v2950_v38 = vld [vmem:[#allocation8 + $0x1d4] ss:$8 sps:$4 sm:$0xff]  }
 0x147   :  { %1313 = vmatmul.mubr.bf16.vlgmr.msra.gmra.mrb[0].mxu1 %v3246_v3  ;;  %v2918_v3 = vld [vmem:[#allocation8 + $0x130] ss:$8 sps:$4 sm:$0xff]  }
 0x148   :  { %1394 = vmatpush1.bf16.msra.mxu1 %v2909_v39  ;;  %v2694_v41 = vpop.f32.mrb[4].mxu0  ;;  %1322 = vmatprep.mubr.bf16.mxu1 %v656_v36 }
 0x149   :  { %v416_v43 = vpop.f32.mrb[5].mxu0  ;;  %1395 = vmatprep.subr.bf16.mxu1 %v2914_v40  ;;  %v2948_v40 = vld [vmem:[#allocation8 + $0x1d0] ss:$8 sps:$4 sm:$0xff]  }
 0x14a   :  { %v2695_v45 = vpop.f32.mrb[6].mxu0 }
 0x14b   :  { %v658_v46 = vpack.c.bf16 %v2695_v45, %v2694_v41  ;;  %v419_v47 = vpop.f32.mrb[7].mxu0 }
 0x14c   :  { %v657_v48 = vpack.c.bf16 %v419_v47, %v416_v43  ;;  %1396 = vmatpush1.bf16.msra.mxu1 %v2912_v42  ;;  %v2953_v42 = vld [vmem:[#allocation8 + $0x1e4] ss:$8 sps:$4 sm:$0xff]   ;;  %v2956_v47 = vld [vmem:[#allocation8 + $0x1f4] ss:$8 sps:$4 sm:$0xff]  }
 0x14d   :  { %1397 = vmatprep.subr.bf16.mxu1 %v2917_v44 }
 0x14f   :  { %1323 = vmatmul.mubr.bf16.gmra.mrb[4].mxu1 %v3248_v5  ;;  %v2924_v5 = vld [vmem:[#allocation8 + $0x150] ss:$8 sps:$4 sm:$0xff]  }
 0x150   :  { %1398 = vmatpush1.bf16.msra.mxu1 %v2915_v49  ;;  %v2698_v51 = vpop.f32.mrb[8].mxu0  ;;  %1332 = vmatprep.mubr.bf16.mxu1 %v657_v48  ;;  %v2981_v48 = vld [vmem:[#allocation9 + $0x40] sm:$0xff]  }
 0x151   :  { %v432_v52 = vpop.f32.mrb[9].mxu0  ;;  %1399 = vmatprep.subr.bf16.mxu1 %v2920_v50  ;;  %v2982_v49 = vld [vmem:[#allocation9] sm:$0xff]   ;;  %v2983_v50 = vld [vmem:[#allocation9 + $0x48] sm:$0xff]   ;;  %2608 = vmatprep.subr.bf16.mxu0 %v2981_v48 }
 0x152   :  { %v2699_v54 = vpop.f32.mrb[10].mxu0  ;;  %2609 = vmatpush3.bf16.msra.mxu0 %v2982_v49 }
 0x153   :  { %v660_v55 = vpack.c.bf16 %v2699_v54, %v2698_v51  ;;  %v435_v56 = vpop.f32.mrb[11].mxu0  ;;  %2610 = vmatprep.subr.bf16.mxu0 %v2983_v50 }
 0x154   :  { %v659_v57 = vpack.c.bf16 %v435_v56, %v432_v52  ;;  %1400 = vmatpush1.bf16.msra.mxu1 %v2918_v3  ;;  %v2954_v3 = vld [vmem:[#allocation8 + $0x1f0] ss:$8 sps:$4 sm:$0xff]  }
 0x155   :  { %1401 = vmatprep.subr.bf16.mxu1 %v2923_v53  ;;  %v2959_v53 = vld [vmem:[#allocation8 + $0x204] ss:$8 sps:$4 sm:$0xff]  }
 0x157   :  { %1333 = vmatmul.mubr.bf16.gmra.mrb[8].mxu1 %v3253_v9 }
 0x158   :  { %1402 = vmatpush1.bf16.msra.mxu1 %v2921_v58  ;;  %v3281_v60 = vpop.f32.mrb[12].mxu0  ;;  %1342 = vmatprep.mubr.bf16.mxu1 %v658_v46 }
 0x159   :  { %v448_v61 = vpop.f32.mrb[13].mxu0  ;;  %1403 = vmatprep.subr.bf16.mxu1 %v2926_v59  ;;  %v2957_v59 = vld [vmem:[#allocation8 + $0x200] ss:$8 sps:$4 sm:$0xff]  }
 0x15a   :  { %v2703_v63 = vpop.f32.mrb[14].mxu0 }
 0x15b   :  { %v662_v0 = vpack.c.bf16 %v2703_v63, %v3281_v60  ;;  %v451_v1 = vpop.f32.mrb[15].mxu0 }
 0x15c   :  { %v661_v2 = vpack.c.bf16 %v451_v1, %v448_v61  ;;  %1404 = vmatpush1.bf16.msra.mxu1 %v2924_v5  ;;  %v2960_v5 = vld [vmem:[#allocation8 + $0x210] ss:$8 sps:$4 sm:$0xff]  }
 0x15d   :  { %1405 = vmatprep.subr.bf16.mxu1 %v2929_v62  ;;  %v2965_v62 = vld [vmem:[#allocation8 + $0x224] ss:$8 sps:$4 sm:$0xff]  }
 0x15f   :  { %1343 = vmatmul.mubr.bf16.gmra.mrb[12].mxu1 %v3257_v12  ;;  %v2933_v12 = vld [vmem:[#allocation8 + $0x180] ss:$8 sps:$4 sm:$0xff]  }
 0x160   :  { %1406 = vmatpush1.bf16.msra.mxu1 %v2927_v4  ;;  %v3285_v9 = vpop.f32.mrb[16].mxu0  ;;  %1352 = vmatprep.mubr.bf16.mxu1 %v659_v57  ;;  %v2963_v4 = vld [vmem:[#allocation8 + $0x220] ss:$8 sps:$4 sm:$0xff]  }
 0x161   :  { %v3287_v8 = vpop.f32.mrb[17].mxu0  ;;  %1407 = vmatprep.subr.bf16.mxu1 %v2932_v6  ;;  %v2968_v6 = vld [vmem:[#allocation8 + $0x234] ss:$8 sps:$4 sm:$0xff]  }
 0x162   :  { %v3289_v11 = vpop.f32.mrb[18].mxu0 }
 0x163   :  { %v664_v13 = vpack.c.bf16 %v3289_v11, %v3285_v9  ;;  %v3293_v14 = vpop.f32.mrb[19].mxu0  ;;  %v2972_v11 = vld [vmem:[#allocation8 + $0x250] ss:$8 sps:$4 sm:$0xff]  }
 0x164   :  { %v663_v16 = vpack.c.bf16 %v3293_v14, %v3287_v8  ;;  %1408 = vmatpush1.bf16.msra.mxu1 %v2930_v7  ;;  %v2966_v8 = vld [vmem:[#allocation8 + $0x230] ss:$8 sps:$4 sm:$0xff]   ;;  %v2971_v14 = vld [vmem:[#allocation8 + $0x244] ss:$8 sps:$4 sm:$0xff]  }
 0x165   :  { %1409 = vmatprep.subr.bf16.mxu1 %v2935_v10 }
 0x167   :  { %1353 = vmatmul.mubr.bf16.gmra.mrb[16].mxu1 %v3261_v15  ;;  %v2939_v15 = vld [vmem:[#allocation8 + $0x1a0] ss:$8 sps:$4 sm:$0xff]  }
 0x168   :  { %1410 = vmatpush1.bf16.msra.mxu1 %v2933_v12  ;;  %v3298_v19 = vpop.f32.mrb[20].mxu0  ;;  %1362 = vmatprep.mubr.bf16.mxu1 %v660_v55  ;;  %v2984_v55 = vld [vmem:[#allocation9 + $0x8] sm:$0xff]  }
 0x169   :  { %v3300_v22 = vpop.f32.mrb[21].mxu0  ;;  %1411 = vmatprep.subr.bf16.mxu1 %v2938_v17  ;;  %2611 = vmatpush3.bf16.msra.mxu0 %v2984_v55 }
 0x16a   :  { %v3302_v25 = vpop.f32.mrb[22].mxu0 }
 0x16b   :  { %v666_v26 = vpack.c.bf16 %v3302_v25, %v3298_v19  ;;  %v3306_v27 = vpop.f32.mrb[23].mxu0 }
 0x16c   :  { %v665_v28 = vpack.c.bf16 %v3306_v27, %v3300_v22  ;;  %1412 = vmatpush1.bf16.msra.mxu1 %v2936_v20  ;;  %v2978_v27 = vld [vmem:[#allocation8 + $0x270] ss:$8 sps:$4 sm:$0xff]  }
 0x16d   :  { %1413 = vmatprep.subr.bf16.mxu1 %v2941_v23  ;;  %v2969_v23 = vld [vmem:[#allocation8 + $0x240] ss:$8 sps:$4 sm:$0xff]  }
 0x16f   :  { %1363 = vmatmul.mubr.bf16.gmra.mrb[20].mxu1 %v3265_v18  ;;  %v2945_v18 = vld [vmem:[#allocation8 + $0x1c0] ss:$8 sps:$4 sm:$0xff]  }
 0x170   :  { %1414 = vmatpush1.bf16.msra.mxu1 %v2939_v15  ;;  %v3311_v30 = vpop.f32.mrb[24].mxu0  ;;  %1372 = vmatprep.mubr.bf16.mxu1 %v661_v2  ;;  %v2974_v15 = vld [vmem:[#allocation8 + $0x254] ss:$8 sps:$4 sm:$0xff]  }
 0x171   :  { %v3313_v32 = vpop.f32.mrb[25].mxu0  ;;  %1415 = vmatprep.subr.bf16.mxu1 %v2944_v29  ;;  %v2977_v29 = vld [vmem:[#allocation8 + $0x264] ss:$8 sps:$4 sm:$0xff]  }
 0x172   :  { %v3315_v34 = vpop.f32.mrb[26].mxu0 }
 0x173   :  { %v668_v35 = vpack.c.bf16 %v3315_v34, %v3311_v30  ;;  %v3319_v36 = vpop.f32.mrb[27].mxu0  ;;  %v3129_v30 = vmov 0   ;;  %v2985_v34 = vld [vmem:[#allocation9 + $0x50] sm:$0xff]  }
 0x174   :  { %v667_v37 = vpack.c.bf16 %v3319_v36, %v3313_v32  ;;  %1416 = vmatpush1.bf16.msra.mxu1 %v2942_v31  ;;  %2612 = vmatprep.subr.bf16.mxu0 %v2985_v34 }
 0x175   :  { %1417 = vmatprep.subr.bf16.mxu1 %v2947_v33 }
 0x177   :  { %1373 = vmatmul.mubr.bf16.gmra.mrb[24].mxu1 %v3269_v21  ;;  %v2951_v21 = vld [vmem:[#allocation8 + $0x1e0] ss:$8 sps:$4 sm:$0xff]  }
 0x178   :  { %1418 = vmatpush1.bf16.msra.mxu1 %v2945_v18  ;;  %v3324_v39 = vpop.f32.mrb[28].mxu0  ;;  %1382 = vmatprep.mubr.bf16.mxu1 %v662_v0 }
 0x179   :  { %v3326_v41 = vpop.f32.mrb[29].mxu0  ;;  %1419 = vmatprep.subr.bf16.mxu1 %v2950_v38 }
 0x17a   :  { %v3328_v43 = vpop.f32.mrb[30].mxu0 }
 0x17b   :  { %v670_v44 = vpack.c.bf16 %v3328_v43, %v3324_v39  ;;  %v3332_v45 = vpop.f32.mrb[31].mxu0  ;;  %v2987_v39 = vld [vmem:[#allocation9 + $0x58] sm:$0xff]   ;;  %v2989_v43 = vld [vmem:[#allocation9 + $0x60] sm:$0xff]  }
 0x17c   :  { %v669_v46 = vpack.c.bf16 %v3332_v45, %v3326_v41  ;;  %1420 = vmatpush1.bf16.msra.mxu1 %v2948_v40  ;;  %v2975_v40 = vld [vmem:[#allocation8 + $0x260] ss:$8 sps:$4 sm:$0xff]   ;;  %v2988_v41 = vld [vmem:[#allocation9 + $0x18] sm:$0xff]  }
 0x17d   :  { %1421 = vmatprep.subr.bf16.mxu1 %v2953_v42  ;;  %v2980_v42 = vld [vmem:[#allocation8 + $0x274] ss:$8 sps:$4 sm:$0xff]   ;;  %v2991_v45 = vld [vmem:[#allocation9 + $0x68] sm:$0xff]  }
 0x17f   :  { %1383 = vmatmul.mubr.bf16.gmra.mrb[28].mxu1 %v3273_v24  ;;  %v2962_v24 = vld [vmem:[#allocation8 + $0x214] ss:$8 sps:$4 sm:$0xff]  }
 0x180   :  { %1422 = vmatpush1.bf16.msra.mxu1 %v2951_v21  ;;  %v2722_v51 = vpop.f32.mrb[32].mxu0 }
 0x181   :  { %v528_v52 = vpop.f32.mrb[33].mxu0  ;;  %1423 = vmatprep.subr.bf16.mxu1 %v2956_v47 }
 0x182   :  { %v2723_v54 = vpop.f32.mrb[34].mxu0 }
 0x183   :  { %v672_v56 = vpack.c.bf16 %v2723_v54, %v2722_v51  ;;  %v531_v57 = vpop.f32.mrb[35].mxu0 }
 0x184   :  { %v671_v58 = vpack.c.bf16 %v531_v57, %v528_v52  ;;  %1424 = vmatpush1.bf16.msra.mxu1 %v2954_v3 }
 0x185   :  { %1506 = vmatprep.subr.bf16.mxu1 %v2959_v53 }
 0x186   :  { %1425 = vmatprep.mubr.bf16.mxu1 %v671_v58 }
 0x187   :  { %1426 = vmatmul.mubr.bf16.vlgmr.msra.gmra.mrb[0].mxu1 %v663_v16 }
 0x188   :  { %1507 = vmatpush1.bf16.msra.mxu1 %v2957_v59  ;;  %1435 = vmatprep.mubr.bf16.mxu1 %v672_v56  ;;  %v2726_v60 = vpop.f32.mrb[36].mxu0 }
 0x189   :  { %v544_v61 = vpop.f32.mrb[37].mxu0  ;;  %1508 = vmatprep.subr.bf16.mxu1 %v2962_v24 }
 0x18a   :  { %v2727_v63 = vpop.f32.mrb[38].mxu0 }
 0x18b   :  { %v674_v0 = vpack.c.bf16 %v2727_v63, %v2726_v60  ;;  %v547_v1 = vpop.f32.mrb[39].mxu0  ;;  %v2993_v60 = vld [vmem:[#allocation9 + $0x70] sm:$0xff]  }
 0x18c   :  { %1509 = vmatpush1.bf16.msra.mxu1 %v2960_v5  ;;  %v673_v2 = vpack.c.bf16 %v547_v1, %v544_v61  ;;  %v2994_v5 = vld [vmem:[#allocation9 + $0x30] sm:$0xff]   ;;  %v2995_v61 = vld [vmem:[#allocation9 + $0x78] sm:$0xff]  }
 0x18d   :  { %1510 = vmatprep.subr.bf16.mxu1 %v2965_v62  ;;  %v2996_v62 = vld [vmem:[#allocation9 + $0x38] sm:$0xff]  }
 0x18f   :  { %1436 = vmatmul.mubr.bf16.gmra.mrb[4].mxu1 %v664_v13 }
 0x190   :  { %1445 = vmatprep.mubr.bf16.mxu1 %v673_v2  ;;  %1511 = vmatpush1.bf16.msra.mxu1 %v2963_v4  ;;  %v2730_v7 = vpop.f32.mrb[40].mxu0 }
 0x191   :  { %v560_v10 = vpop.f32.mrb[41].mxu0  ;;  %1512 = vmatprep.subr.bf16.mxu1 %v2968_v6 }
 0x192   :  { %v2731_v16 = vpop.f32.mrb[42].mxu0 }
 0x193   :  { %v676_v12 = vpack.c.bf16 %v2731_v16, %v2730_v7  ;;  %v563_v17 = vpop.f32.mrb[43].mxu0 }
 0x194   :  { %1513 = vmatpush1.bf16.msra.mxu1 %v2966_v8  ;;  %v675_v20 = vpack.c.bf16 %v563_v17, %v560_v10 }
 0x195   :  { %1514 = vmatprep.subr.bf16.mxu1 %v2971_v14 }
 0x197   :  { %1446 = vmatmul.mubr.bf16.gmra.mrb[8].mxu1 %v665_v28 }
 0x198   :  { %1455 = vmatprep.mubr.bf16.mxu1 %v674_v0  ;;  %1515 = vmatpush1.bf16.msra.mxu1 %v2969_v23  ;;  %v2734_v9 = vpop.f32.mrb[44].mxu0 }
 0x199   :  { %v576_v13 = vpop.f32.mrb[45].mxu0  ;;  %1516 = vmatprep.subr.bf16.mxu1 %v2974_v15 }
 0x19a   :  { %v2735_v31 = vpop.f32.mrb[46].mxu0 }
 0x19b   :  { %v678_v33 = vpack.c.bf16 %v2735_v31, %v2734_v9  ;;  %v579_v18 = vpop.f32.mrb[47].mxu0 }
 0x19c   :  { %1517 = vmatpush1.bf16.msra.mxu1 %v2972_v11  ;;  %v677_v38 = vpack.c.bf16 %v579_v18, %v576_v13 }
 0x19d   :  { %1518 = vmatprep.subr.bf16.mxu1 %v2977_v29 }
 0x19f   :  { %1456 = vmatmul.mubr.bf16.gmra.mrb[12].mxu1 %v666_v26 }
 0x1a0   :  { %1465 = vmatprep.mubr.bf16.mxu1 %v675_v20  ;;  %1519 = vmatpush1.bf16.msra.mxu1 %v2975_v40  ;;  %v2738_v22 = vpop.f32.mrb[48].mxu0 }
 0x1a1   :  { %1520 = vmatprep.subr.bf16.mxu1 %v2980_v42  ;;  %v592_v28 = vpop.f32.mrb[49].mxu0 }
 0x1a2   :  { %v2739_v21 = vpop.f32.mrb[50].mxu0 }
 0x1a3   :  { %v680_v47 = vpack.c.bf16 %v2739_v21, %v2738_v22  ;;  %v595_v48 = vpop.f32.mrb[51].mxu0 }
 0x1a4   :  { %1521 = vmatpush1.bf16.msra.mxu1 %v2978_v27  ;;  %v679_v49 = vpack.c.bf16 %v595_v48, %v592_v28 }
 0x1a7   :  { %1466 = vmatmul.mubr.bf16.gmra.mrb[16].mxu1 %v667_v37 }
 0x1a8   :  { %1475 = vmatprep.mubr.bf16.mxu1 %v676_v12  ;;  %v2742_v50 = vpop.f32.mrb[52].mxu0 }
 0x1a9   :  { %v608_v51 = vpop.f32.mrb[53].mxu0 }
 0x1aa   :  { %v2743_v19 = vpop.f32.mrb[54].mxu0 }
 0x1ab   :  { %v682_v25 = vpack.c.bf16 %v2743_v19, %v2742_v50  ;;  %v611_v26 = vpop.f32.mrb[55].mxu0 }
 0x1ac   :  { %v681_v3 = vpack.c.bf16 %v611_v26, %v608_v51 }
 0x1af   :  { %1476 = vmatmul.mubr.bf16.gmra.mrb[20].mxu1 %v668_v35  ;;  %v2986_v35 = vld [vmem:[#allocation9 + $0x10] sm:$0xff]  }
 0x1b0   :  { %1485 = vmatprep.mubr.bf16.mxu1 %v677_v38  ;;  %v2746_v52 = vpop.f32.mrb[56].mxu0  ;;  %2613 = vmatpush3.bf16.msra.mxu0 %v2986_v35 }
 0x1b1   :  { %v624_v53 = vpop.f32.mrb[57].mxu0  ;;  %2614 = vmatprep.subr.bf16.mxu0 %v2987_v39 }
 0x1b2   :  { %v2747_v54 = vpop.f32.mrb[58].mxu0 }
 0x1b3   :  { %v684_v55 = vpack.c.bf16 %v2747_v54, %v2746_v52  ;;  %v627_v56 = vpop.f32.mrb[59].mxu0 }
 0x1b4   :  { %v683_v57 = vpack.c.bf16 %v627_v56, %v624_v53  ;;  %2615 = vmatpush3.bf16.msra.mxu0 %v2988_v41 }
 0x1b5   :  { %2616 = vmatprep.subr.bf16.mxu0 %v2989_v43 }
 0x1b7   :  { %1486 = vmatmul.mubr.bf16.gmra.mrb[24].mxu1 %v669_v46  ;;  %v2992_v46 = vld [vmem:[#allocation9 + $0x28] sm:$0xff]  }
 0x1b8   :  { %1495 = vmatprep.mubr.bf16.mxu1 %v678_v33  ;;  %v2750_v32 = vpop.f32.mrb[60].mxu0 }
 0x1b9   :  { %v640_v36 = vpop.f32.mrb[61].mxu0 }
 0x1ba   :  { %v2751_v37 = vpop.f32.mrb[62].mxu0 }
 0x1bb   :  { %v686_v58 = vpack.c.bf16 %v2751_v37, %v2750_v32  ;;  %v643_v59 = vpop.f32.mrb[63].mxu0 }
 0x1bc   :  { %v685_v24 = vpack.c.bf16 %v643_v59, %v640_v36 }
 0x1bf   :  { %1496 = vmatmul.mubr.bf16.gmra.mrb[28].mxu1 %v670_v44  ;;  %v2990_v44 = vld [vmem:[#allocation9 + $0x20] sm:$0xff]  }
 0x1c0   :  { %1538 = vmatprep.mubr.bf16.mxu1 %v3129_v30  ;;  %2617 = vmatpush3.bf16.msra.mxu0 %v2990_v44 }
 0x1c1   :  { %2618 = vmatprep.subr.bf16.mxu0 %v2991_v45 }
 0x1c4   :  { %2619 = vmatpush3.bf16.msra.mxu0 %v2992_v46 }
 0x1c5   :  { %2620 = vmatprep.subr.bf16.mxu0 %v2993_v60 }
 0x1c7   :  { %1539 = vmatmul.mubr.bf16.vlgmr.msra.gmra.mrb[0].mxu1 %v679_v49 }
 0x1c8   :  { %1548 = vmatprep.mubr.bf16.mxu1 %v3129_v30  ;;  %2621 = vmatpush3.bf16.msra.mxu0 %v2994_v5 }
 0x1c9   :  { %2622 = vmatprep.subr.bf16.mxu0 %v2995_v61 }
 0x1cc   :  { %2623 = vmatpush3.bf16.msra.mxu0 %v2996_v62 }
 0x1cf   :  { %1549 = vmatmul.mubr.bf16.gmra.mrb[4].mxu1 %v680_v47 }
 0x1d0   :  { %1558 = vmatprep.mubr.bf16.mxu1 %v3129_v30 }
 0x1d7   :  { %1559 = vmatmul.mubr.bf16.gmra.mrb[8].mxu1 %v681_v3 }
 0x1d8   :  { %1568 = vmatprep.mubr.bf16.mxu1 %v3129_v30 }
 0x1df   :  { %1569 = vmatmul.mubr.bf16.gmra.mrb[12].mxu1 %v682_v25 }
 0x1e0   :  { %1578 = vmatprep.mubr.bf16.mxu1 %v3129_v30 }
 0x1e7   :  { %1579 = vmatmul.mubr.bf16.gmra.mrb[16].mxu1 %v683_v57 }
 0x1e8   :  { %1588 = vmatprep.mubr.bf16.mxu1 %v3129_v30 }
 0x1ef   :  { %1589 = vmatmul.mubr.bf16.gmra.mrb[20].mxu1 %v684_v55 }
 0x1f0   :  { %1598 = vmatprep.mubr.bf16.mxu1 %v3129_v30 }
 0x1f7   :  { %1599 = vmatmul.mubr.bf16.gmra.mrb[24].mxu1 %v685_v24 }
 0x1f8   :  { %1608 = vmatprep.mubr.bf16.mxu1 %v3129_v30 }
 0x1ff   :  { %1609 = vmatmul.mubr.bf16.gmra.mrb[28].mxu1 %v686_v58 }
 0x29a   :  { %v3361_v63 = vpop.f32.mrb[0].mxu1 }
 0x29b   :  { %v3363_v0 = vpop.f32.mrb[1].mxu1  ;;  %v1663_v2 = vmul.f32 %v3361_v63, %v3361_v63 }
 0x29c   :  { %v3365_v1 = vpop.f32.mrb[2].mxu1  ;;  %v1664_v8 = vmul.f32 %v3363_v0, %v3363_v0 }
 0x29d   :  { %v1619_v4 = vadd.f32 %v3365_v1, %v3361_v63  ;;  %v1665_v6 = vmul.f32 %v3365_v1, %v3365_v1  ;;  %v3373_v7 = vpop.f32.mrb[3].mxu1 }
 0x29e   :  { %v1640_v10 = vadd.f32 %v3373_v7, %v3363_v0  ;;  %v1666_v14 = vmul.f32 %v3373_v7, %v3373_v7 }
 0x29f   :  { %v1695_v16 = vadd.f32 %v1665_v6, %v1663_v2 }
 0x2a0   :  { %v1716_v12 = vadd.f32 %v1666_v14, %v1664_v8 }
 0x2a2   :  { %v3381_v17 = vpop.f32.mrb[4].mxu1 }
 0x2a3   :  { %v1620_v20 = vadd.f32 %v1619_v4, %v3381_v17  ;;  %v1667_v23 = vmul.f32 %v3381_v17, %v3381_v17  ;;  %v3386_v15 = vpop.f32.mrb[5].mxu1 }
 0x2a4   :  { %v1641_v9 = vadd.f32 %v1640_v10, %v3386_v15  ;;  %v1668_v11 = vmul.f32 %v3386_v15, %v3386_v15  ;;  %v1554_v13 = vpop.f32.mrb[6].mxu1 }
 0x2a5   :  { %v1696_v29 = vadd.f32 %v1695_v16, %v1667_v23  ;;  %v1621_v31 = vadd.f32 %v1620_v20, %v1554_v13  ;;  %v1669_v33 = vmul.f32 %v1554_v13, %v1554_v13  ;;  %v1556_v18 = vpop.f32.mrb[7].mxu1 }
 0x2a6   :  { %v1717_v38 = vadd.f32 %v1716_v12, %v1668_v11  ;;  %v1642_v40 = vadd.f32 %v1641_v9, %v1556_v18  ;;  %v1670_v42 = vmul.f32 %v1556_v18, %v1556_v18 }
 0x2a7   :  { %v1697_v22 = vadd.f32 %v1696_v29, %v1669_v33 }
 0x2a8   :  { %v1718_v27 = vadd.f32 %v1717_v38, %v1670_v42 }
 0x2aa   :  { %v1560_v28 = vpop.f32.mrb[8].mxu1 }
 0x2ab   :  { %v1622_v21 = vadd.f32 %v1621_v31, %v1560_v28  ;;  %v1671_v47 = vmul.f32 %v1560_v28, %v1560_v28  ;;  %v1562_v48 = vpop.f32.mrb[9].mxu1 }
 0x2ac   :  { %v1643_v49 = vadd.f32 %v1642_v40, %v1562_v48  ;;  %v1672_v50 = vmul.f32 %v1562_v48, %v1562_v48  ;;  %v1564_v51 = vpop.f32.mrb[10].mxu1 }
 0x2ad   :  { %v1698_v19 = vadd.f32 %v1697_v22, %v1671_v47  ;;  %v1623_v25 = vadd.f32 %v1622_v21, %v1564_v51  ;;  %v1673_v26 = vmul.f32 %v1564_v51, %v1564_v51  ;;  %v1566_v3 = vpop.f32.mrb[11].mxu1 }
 0x2ae   :  { %v1719_v52 = vadd.f32 %v1718_v27, %v1672_v50  ;;  %v1644_v53 = vadd.f32 %v1643_v49, %v1566_v3  ;;  %v1674_v54 = vmul.f32 %v1566_v3, %v1566_v3 }
 0x2af   :  { %v1699_v55 = vadd.f32 %v1698_v19, %v1673_v26 }
 0x2b0   :  { %v1720_v56 = vadd.f32 %v1719_v52, %v1674_v54 }
 0x2b2   :  { %v1570_v57 = vpop.f32.mrb[12].mxu1 }
 0x2b3   :  { %v1624_v32 = vadd.f32 %v1623_v25, %v1570_v57  ;;  %v1675_v36 = vmul.f32 %v1570_v57, %v1570_v57  ;;  %v1572_v37 = vpop.f32.mrb[13].mxu1 }
 0x2b4   :  { %v1645_v58 = vadd.f32 %v1644_v53, %v1572_v37  ;;  %v1676_v59 = vmul.f32 %v1572_v37, %v1572_v37  ;;  %v1574_v24 = vpop.f32.mrb[14].mxu1 }
 0x2b5   :  { %v1700_v30 = vadd.f32 %v1699_v55, %v1675_v36  ;;  %v1625_v34 = vadd.f32 %v1624_v32, %v1574_v24  ;;  %v1677_v35 = vmul.f32 %v1574_v24, %v1574_v24  ;;  %v1576_v39 = vpop.f32.mrb[15].mxu1 }
 0x2b6   :  { %v1721_v41 = vadd.f32 %v1720_v56, %v1676_v59  ;;  %v1646_v43 = vadd.f32 %v1645_v58, %v1576_v39  ;;  %v1678_v44 = vmul.f32 %v1576_v39, %v1576_v39 }
 0x2b7   :  { %v1701_v45 = vadd.f32 %v1700_v30, %v1677_v35 }
 0x2b8   :  { %v1722_v46 = vadd.f32 %v1721_v41, %v1678_v44 }
 0x2ba   :  { %v1580_v60 = vpop.f32.mrb[16].mxu1 }
 0x2bb   :  { %v1626_v5 = vadd.f32 %v1625_v34, %v1580_v60  ;;  %v1679_v61 = vmul.f32 %v1580_v60, %v1580_v60  ;;  %v1582_v62 = vpop.f32.mrb[17].mxu1 }
 0x2bc   :  { %v1647_v2 = vadd.f32 %v1646_v43, %v1582_v62  ;;  %v1680_v4 = vmul.f32 %v1582_v62, %v1582_v62  ;;  %v1584_v6 = vpop.f32.mrb[18].mxu1 }
 0x2bd   :  { %v1702_v8 = vadd.f32 %v1701_v45, %v1679_v61  ;;  %v1627_v10 = vadd.f32 %v1626_v5, %v1584_v6  ;;  %v1681_v14 = vmul.f32 %v1584_v6, %v1584_v6  ;;  %v1586_v16 = vpop.f32.mrb[19].mxu1 }
 0x2be   :  { %v1723_v12 = vadd.f32 %v1722_v46, %v1680_v4  ;;  %v1648_v20 = vadd.f32 %v1647_v2, %v1586_v16  ;;  %v1682_v23 = vmul.f32 %v1586_v16, %v1586_v16 }
 0x2bf   :  { %v1703_v9 = vadd.f32 %v1702_v8, %v1681_v14 }
 0x2c0   :  { %v1724_v11 = vadd.f32 %v1723_v12, %v1682_v23 }
 0x2c2   :  { %v1590_v13 = vpop.f32.mrb[20].mxu1 }
 0x2c3   :  { %v1628_v29 = vadd.f32 %v1627_v10, %v1590_v13  ;;  %v1683_v31 = vmul.f32 %v1590_v13, %v1590_v13  ;;  %v1592_v33 = vpop.f32.mrb[21].mxu1 }
 0x2c4   :  { %v1649_v18 = vadd.f32 %v1648_v20, %v1592_v33  ;;  %v1684_v38 = vmul.f32 %v1592_v33, %v1592_v33  ;;  %v1594_v40 = vpop.f32.mrb[22].mxu1 }
 0x2c5   :  { %v1704_v42 = vadd.f32 %v1703_v9, %v1683_v31  ;;  %v1629_v22 = vadd.f32 %v1628_v29, %v1594_v40  ;;  %v1685_v27 = vmul.f32 %v1594_v40, %v1594_v40  ;;  %v1596_v28 = vpop.f32.mrb[23].mxu1 }
 0x2c6   :  { %v1725_v21 = vadd.f32 %v1724_v11, %v1684_v38  ;;  %v1650_v47 = vadd.f32 %v1649_v18, %v1596_v28  ;;  %v1686_v48 = vmul.f32 %v1596_v28, %v1596_v28 }
 0x2c7   :  { %v1705_v49 = vadd.f32 %v1704_v42, %v1685_v27 }
 0x2c8   :  { %v1726_v50 = vadd.f32 %v1725_v21, %v1686_v48 }
 0x2ca   :  { %v1600_v51 = vpop.f32.mrb[24].mxu1 }
 0x2cb   :  { %v1630_v19 = vadd.f32 %v1629_v22, %v1600_v51  ;;  %v1687_v25 = vmul.f32 %v1600_v51, %v1600_v51  ;;  %v1602_v26 = vpop.f32.mrb[25].mxu1 }
 0x2cc   :  { %v1651_v3 = vadd.f32 %v1650_v47, %v1602_v26  ;;  %v1688_v52 = vmul.f32 %v1602_v26, %v1602_v26  ;;  %v1604_v53 = vpop.f32.mrb[26].mxu1 }
 0x2cd   :  { %v1706_v54 = vadd.f32 %v1705_v49, %v1687_v25  ;;  %v1631_v55 = vadd.f32 %v1630_v19, %v1604_v53  ;;  %v1689_v56 = vmul.f32 %v1604_v53, %v1604_v53  ;;  %v1606_v57 = vpop.f32.mrb[27].mxu1 }
 0x2ce   :  { %v1727_v32 = vadd.f32 %v1726_v50, %v1688_v52  ;;  %v1652_v36 = vadd.f32 %v1651_v3, %v1606_v57  ;;  %v1690_v37 = vmul.f32 %v1606_v57, %v1606_v57 }
 0x2cf   :  { %v1707_v58 = vadd.f32 %v1706_v54, %v1689_v56 }
 0x2d0   :  { %v1728_v59 = vadd.f32 %v1727_v32, %v1690_v37 }
 0x2d2   :  { %v1610_v24 = vpop.f32.mrb[28].mxu1 }
 0x2d3   :  { %v1632_v30 = vadd.f32 %v1631_v55, %v1610_v24  ;;  %v1691_v34 = vmul.f32 %v1610_v24, %v1610_v24  ;;  %v1612_v35 = vpop.f32.mrb[29].mxu1 }
 0x2d4   :  { %v1653_v39 = vadd.f32 %v1652_v36, %v1612_v35  ;;  %v1692_v41 = vmul.f32 %v1612_v35, %v1612_v35  ;;  %v1614_v43 = vpop.f32.mrb[30].mxu1 }
 0x2d5   :  { %v1708_v44 = vadd.f32 %v1707_v58, %v1691_v34  ;;  %v1633_v45 = vadd.f32 %v1632_v30, %v1614_v43  ;;  %v1693_v46 = vmul.f32 %v1614_v43, %v1614_v43  ;;  %v1616_v60 = vpop.f32.mrb[31].mxu1  ;;  %v727_v58 = vlaneseq }
 0x2d6   :  { %v1729_v5 = vadd.f32 %v1728_v59, %v1692_v41  ;;  %v1654_v61 = vadd.f32 %v1653_v39, %v1616_v60  ;;  %v1694_v62 = vmul.f32 %v1616_v60, %v1616_v60 }
 0x2d7   :  { %v1634_v2 = vrot.slane %v1633_v45, 4  ;;  %v1709_v4 = vadd.f32 %v1708_v44, %v1693_v46 }
 0x2d8   :  { %v1655_v6 = vrot.slane %v1654_v61, 4  ;;  %v1730_v8 = vadd.f32 %v1729_v5, %v1694_v62 }
 0x2d9   :  { %v1635_v10 = vadd.f32 %v1634_v2, %v1633_v45  ;;  %v1710_v14 = vrot.slane %v1709_v4, 4 }
 0x2da   :  { %v1656_v16 = vadd.f32 %v1655_v6, %v1654_v61  ;;  %v1731_v12 = vrot.slane %v1730_v8, 4 }
 0x2db   :  { %v1636_v20 = vrot.slane %v1635_v10, 2  ;;  %v1711_v23 = vadd.f32 %v1710_v14, %v1709_v4 }
 0x2dc   :  { %v1657_v9 = vrot.slane %v1656_v16, 2  ;;  %v1732_v11 = vadd.f32 %v1731_v12, %v1730_v8 }
 0x2dd   :  { %v1637_v13 = vadd.f32 %v1636_v20, %v1635_v10  ;;  %v1712_v29 = vrot.slane %v1711_v23, 2 }
 0x2de   :  { %v1658_v31 = vadd.f32 %v1657_v9, %v1656_v16  ;;  %v1733_v33 = vrot.slane %v1732_v11, 2 }
 0x2df   :  { %v1638_v18 = vrot.slane %v1637_v13, 1  ;;  %v1713_v38 = vadd.f32 %v1712_v29, %v1711_v23 }
 0x2e0   :  { %v1659_v40 = vrot.slane %v1658_v31, 1  ;;  %v1734_v42 = vadd.f32 %v1733_v33, %v1732_v11 }
 0x2e1   :  { %v1639_v22 = vadd.f32 %v1638_v18, %v1637_v13  ;;  %v1714_v27 = vrot.slane %v1713_v38, 1 }
 0x2e2   :  { %v1660_v28 = vadd.f32 %v1659_v40, %v1658_v31  ;;  %v1735_v21 = vrot.slane %v1734_v42, 1  ;;  %v3131_v40 = vmov 0.0  }
 0x2e3   :  { %v1661_v47 = vmul.f32 0.05, %v1639_v22  ;;  %v1715_v48 = vadd.f32 %v1714_v27, %v1713_v38 }
 0x2e4   :  { %v1662_v49 = vmul.f32 0.05, %v1660_v28  ;;  %v1736_v50 = vadd.f32 %v1735_v21, %v1734_v42  ;;  %v3132_v28 = vmov 0.0|0.0  }
 0x2e5   :  { %v1737_v51 = vmul.f32 0.05, %v1715_v48  ;;  %v1739_v19 = vmul.f32 %v1661_v47, %v1661_v47  ;;  %v1745_v25 = vsub.f32 %v3361_v63, %v1661_v47  ;;  %v1747_v26 = vsub.f32 %v3365_v1, %v1661_v47 }
 0x2e6   :  { %v1738_v3 = vmul.f32 0.05, %v1736_v50  ;;  %v1740_v52 = vmul.f32 %v1662_v49, %v1662_v49  ;;  %v1750_v53 = vsub.f32 %v3386_v15, %v1662_v49  ;;  %v1746_v54 = vsub.f32 %v3363_v0, %v1662_v49  ;;  %v1813_v15 = vld [vmem:[%s3517_s3] sm:$0x3] }
 0x2e7   :  { %v1741_v55 = vsub.f32 %v1737_v51, %v1739_v19  ;;  %v1748_v56 = vsub.f32 %v3373_v7, %v1662_v49  ;;  %v1749_v57 = vsub.f32 %v3381_v17, %v1661_v47  ;;  %v728_v63 = vshrl.u32 %v727_v58, 7  ;;  %v1857_v7 = vld [vmem:[%s3518_s4] sm:$0x3] }
 0x2e8   :  { %v1742_v32 = vsub.f32 %v1738_v3, %v1740_v52 }
 0x2e9   :  { %v1743_v36 = vmax.f32 %v1741_v55, 0.0  ;;  %v1817_v1 = vsub.s32 0, %v728_v63  ;;  %v1821_v0 = vsub.s32 1, %v728_v63  ;;  %v730_v2 = vadd.s32 16, %v728_v63 }
 0x2ea   :  { %v1744_v37 = vmax.f32 %v1742_v32, 0.0 }
 0x2eb   :  { %v1777_v59 = vadd.f32 1e-05, %v1743_v36  ;;  %v1818_v17 = vrot.slane %v1813_v15, %v1817_v1  ;;  %v1822_v34 = vrot.slane %v1813_v15, %v1821_v0  ;;  %v1862_v43 = vrot.slane %v1857_v7, %v1817_v1 }
 0x2ec   :  { %v1778_v24 = vadd.f32 1e-05, %v1744_v37  ;;  %v1866_v60 = vrot.slane %v1857_v7, %v1821_v0  ;;  %vm746_vm0 = vcmp.lt.s32.totalorder %v730_v2, 20 }
 0x2ed   :  { %2997 = vrsqrt.f32 %v1777_v59  ;;  %vm2560_vm2 = vmpackc.low %vm3130_vm1, %vm746_vm0 }
 0x2ee   :  { %2999 = vrsqrt.f32 %v1778_v24 }
 0x2f7   :  { %v2998_v30 = vpop.eup %2997 }
 0x2f8   :  { %v3000_v35 = vpop.eup %2999  ;;  %v1781_v39 = vmul.f32 %v2998_v30, %v1745_v25  ;;  %v1783_v41 = vmul.f32 %v2998_v30, %v1747_v26  ;;  %v1785_v44 = vmul.f32 %v2998_v30, %v1749_v57 }
 0x2f9   :  { %v1782_v45 = vmul.f32 %v3000_v35, %v1746_v54  ;;  %v1784_v46 = vmul.f32 %v3000_v35, %v1748_v56  ;;  %v1786_v5 = vmul.f32 %v3000_v35, %v1750_v53 }
 0x2fa   :  { %v1825_v61 = vmul.f32 %v1818_v17, %v1781_v39  ;;  %v1827_v62 = vmul.f32 %v1818_v17, %v1783_v41  ;;  %v1829_v11 = vmul.f32 %v1818_v17, %v1785_v44 }
 0x2fb   :  { %v1826_v4 = vmul.f32 %v1822_v34, %v1782_v45  ;;  %v1828_v6 = vmul.f32 %v1822_v34, %v1784_v46  ;;  %v1830_v8 = vmul.f32 %v1822_v34, %v1786_v5 }
 0x2fc   :  { %v1869_v10 = vadd.f32 %v1862_v43, %v1825_v61  ;;  %v1871_v14 = vadd.f32 %v1862_v43, %v1827_v62  ;;  %v1873_v38 = vadd.f32 %v1862_v43, %v1829_v11 }
 0x2fd   :  { %v1870_v16 = vadd.f32 %v1866_v60, %v1826_v4  ;;  %v1872_v12 = vadd.f32 %v1866_v60, %v1828_v6  ;;  %v1874_v20 = vadd.f32 %v1866_v60, %v1830_v8 }
 0x2fe   :  { %v1901_v23 = vmax.f32 %v1869_v10, 0.0  ;;  %v1903_v9 = vmax.f32 %v1871_v14, 0.0  ;;  %v1905_v22 = vmax.f32 %v1873_v38, 0.0 }
 0x2ff   :  { %v1902_v13 = vmax.f32 %v1870_v16, 0.0  ;;  %v1904_v29 = vmax.f32 %v1872_v12, 0.0  ;;  %v1906_v31 = vmax.f32 %v1874_v20, 0.0 }
 0x300   :  { %v1997_v33 = vpack.c.bf16 %v1903_v9, %v1901_v23  ;;  %v2564_v27 = vpack.c.bf16 %v3131_v40, %v1905_v22 }
 0x301   :  { %v1998_v18 = vpack.c.bf16 %v1904_v29, %v1902_v13  ;;  %v2561_v42 = vpack.c.bf16 %v3131_v40, %v1906_v31 }
 0x303   :  { %2173 = vmatprep.mubr.bf16.mxu0 %v1998_v18 }
 0x304   :  { %2174 = vmatmul.mubr.bf16.vlgmr.msra.gmra.mrb[64].mxu0 %v1997_v33 }
 0x305   :  { %2562 = vmatprep.mubr.msk.bf16.mxu0 %vm2560_vm2, %v2561_v42 }
 0x30c   :  { %2565 = vmatmul.mubr.msk.bf16.gmra.mrb[68].mxu0 %vm2560_vm2, %v2564_v27 }
 0x30d   :  { %2189 = vmatprep.mubr.bf16.mxu0 %v3132_v28 }
 0x314   :  { %2190 = vmatmul.mubr.bf16.gmra.mrb[72].mxu0 %v3132_v28 }
 0x315   :  { %2197 = vmatprep.mubr.bf16.mxu0 %v3132_v28 }
 0x31c   :  { %2198 = vmatmul.mubr.bf16.gmra.mrb[76].mxu0 %v3132_v28 }
 0x31d   :  { %2205 = vmatprep.mubr.bf16.mxu0 %v3132_v28 }
 0x324   :  { %2206 = vmatmul.mubr.bf16.gmra.mrb[80].mxu0 %v3132_v28 }
 0x325   :  { %2213 = vmatprep.mubr.bf16.mxu0 %v3132_v28 }
 0x32c   :  { %2214 = vmatmul.mubr.bf16.gmra.mrb[84].mxu0 %v3132_v28 }
 0x32d   :  { %2221 = vmatprep.mubr.bf16.mxu0 %v3132_v28 }
 0x334   :  { %2222 = vmatmul.mubr.bf16.gmra.mrb[88].mxu0 %v3132_v28 }
 0x335   :  { %2229 = vmatprep.mubr.bf16.mxu0 %v3132_v28 }
 0x33c   :  { %2230 = vmatmul.mubr.bf16.gmra.mrb[92].mxu0 %v3132_v28 }
 0x3d7   :  { %v2624_v21 = vpop.f32.mrb[64].mxu0 }
 0x3d8   :  { %v2625_v47 = vpop.f32.mrb[65].mxu0 }
 0x3d9   :  { %v3403_v48 = vadd.f32 %v2625_v47, %v2624_v21  ;;  %v2627_v49 = vpop.f32.mrb[66].mxu0 }
 0x3da   :  { %v2628_v50 = vpop.f32.mrb[67].mxu0 }
 0x3db   :  { %v3405_v51 = vadd.f32 %v2628_v50, %v2627_v49  ;;  %v2260_v54 = vmul.f32 %v3403_v48, %v3403_v48 }
 0x3dd   :  { %v2261_v26 = vmul.f32 %v3405_v51, %v3405_v51  ;;  %v2238_v55 = vadd.f32 %v3405_v51, %v3403_v48 }
 0x3df   :  { %v2630_v19 = vpop.f32.mrb[68].mxu0  ;;  %v2276_v32 = vadd.f32 %v2261_v26, %v2260_v54 }
 0x3e0   :  { %v2631_v25 = vpop.f32.mrb[69].mxu0 }
 0x3e1   :  { %v3409_v3 = vadd.f32 %v2631_v25, %v2630_v19  ;;  %v2633_v52 = vpop.f32.mrb[70].mxu0 }
 0x3e2   :  { %v2634_v53 = vpop.f32.mrb[71].mxu0 }
 0x3e3   :  { %v2262_v56 = vmul.f32 %v3409_v3, %v3409_v3  ;;  %v3417_v57 = vadd.f32 %v2634_v53, %v2633_v52  ;;  %v2239_v36 = vadd.f32 %v3409_v3, %v2238_v55 }
 0x3e5   :  { %v2277_v37 = vadd.f32 %v2276_v32, %v2262_v56  ;;  %v2263_v58 = vmul.f32 %v3417_v57, %v3417_v57  ;;  %v2240_v63 = vadd.f32 %v3417_v57, %v2239_v36 }
 0x3e7   :  { %v2636_v59 = vpop.f32.mrb[72].mxu0  ;;  %v2278_v7 = vadd.f32 %v2277_v37, %v2263_v58 }
 0x3e8   :  { %v2637_v24 = vpop.f32.mrb[73].mxu0 }
 0x3e9   :  { %v3423_v1 = vadd.f32 %v2637_v24, %v2636_v59  ;;  %v2639_v15 = vpop.f32.mrb[74].mxu0 }
 0x3ea   :  { %v2640_v0 = vpop.f32.mrb[75].mxu0 }
 0x3eb   :  { %v2241_v17 = vadd.f32 %v3423_v1, %v2240_v63  ;;  %v2264_v30 = vmul.f32 %v3423_v1, %v3423_v1  ;;  %v3428_v34 = vadd.f32 %v2640_v0, %v2639_v15 }
 0x3ed   :  { %v2279_v35 = vadd.f32 %v2278_v7, %v2264_v30  ;;  %v2242_v39 = vadd.f32 %v3428_v34, %v2241_v17  ;;  %v2265_v41 = vmul.f32 %v3428_v34, %v3428_v34 }
 0x3ef   :  { %v2280_v43 = vadd.f32 %v2279_v35, %v2265_v41  ;;  %v2642_v44 = vpop.f32.mrb[76].mxu0 }
 0x3f0   :  { %v2643_v45 = vpop.f32.mrb[77].mxu0 }
 0x3f1   :  { %v3433_v46 = vadd.f32 %v2643_v45, %v2642_v44  ;;  %v2645_v60 = vpop.f32.mrb[78].mxu0 }
 0x3f2   :  { %v2646_v5 = vpop.f32.mrb[79].mxu0 }
 0x3f3   :  { %v2243_v61 = vadd.f32 %v3433_v46, %v2242_v39  ;;  %v2266_v62 = vmul.f32 %v3433_v46, %v3433_v46  ;;  %v3438_v2 = vadd.f32 %v2646_v5, %v2645_v60 }
 0x3f5   :  { %v2281_v4 = vadd.f32 %v2280_v43, %v2266_v62  ;;  %v2244_v6 = vadd.f32 %v3438_v2, %v2243_v61  ;;  %v2267_v8 = vmul.f32 %v3438_v2, %v3438_v2 }
 0x3f7   :  { %v2282_v10 = vadd.f32 %v2281_v4, %v2267_v8  ;;  %v2648_v14 = vpop.f32.mrb[80].mxu0 }
 0x3f8   :  { %v2649_v16 = vpop.f32.mrb[81].mxu0 }
 0x3f9   :  { %v3443_v12 = vadd.f32 %v2649_v16, %v2648_v14  ;;  %v2651_v20 = vpop.f32.mrb[82].mxu0 }
 0x3fa   :  { %v2652_v23 = vpop.f32.mrb[83].mxu0 }
 0x3fb   :  { %v2245_v9 = vadd.f32 %v3443_v12, %v2244_v6  ;;  %v2268_v11 = vmul.f32 %v3443_v12, %v3443_v12  ;;  %v3448_v13 = vadd.f32 %v2652_v23, %v2651_v20 }
 0x3fd   :  { %v2283_v29 = vadd.f32 %v2282_v10, %v2268_v11  ;;  %v2246_v31 = vadd.f32 %v3448_v13, %v2245_v9  ;;  %v2269_v33 = vmul.f32 %v3448_v13, %v3448_v13 }
 0x3ff   :  { %v2284_v18 = vadd.f32 %v2283_v29, %v2269_v33  ;;  %v2654_v38 = vpop.f32.mrb[84].mxu0 }
 0x400   :  { %v2655_v40 = vpop.f32.mrb[85].mxu0 }
 0x401   :  { %v3453_v42 = vadd.f32 %v2655_v40, %v2654_v38  ;;  %v2657_v22 = vpop.f32.mrb[86].mxu0 }
 0x402   :  { %v2658_v27 = vpop.f32.mrb[87].mxu0 }
 0x403   :  { %v2247_v28 = vadd.f32 %v3453_v42, %v2246_v31  ;;  %v2270_v21 = vmul.f32 %v3453_v42, %v3453_v42  ;;  %v3458_v47 = vadd.f32 %v2658_v27, %v2657_v22 }
 0x405   :  { %v2285_v49 = vadd.f32 %v2284_v18, %v2270_v21  ;;  %v2248_v50 = vadd.f32 %v3458_v47, %v2247_v28  ;;  %v2271_v19 = vmul.f32 %v3458_v47, %v3458_v47 }
 0x407   :  { %v2286_v25 = vadd.f32 %v2285_v49, %v2271_v19  ;;  %v2660_v26 = vpop.f32.mrb[88].mxu0 }
 0x408   :  { %v2661_v52 = vpop.f32.mrb[89].mxu0 }
 0x409   :  { %v3463_v53 = vadd.f32 %v2661_v52, %v2660_v26  ;;  %v2663_v54 = vpop.f32.mrb[90].mxu0 }
 0x40a   :  { %v2664_v55 = vpop.f32.mrb[91].mxu0 }
 0x40b   :  { %v2249_v56 = vadd.f32 %v3463_v53, %v2248_v50  ;;  %v2272_v32 = vmul.f32 %v3463_v53, %v3463_v53  ;;  %v3468_v36 = vadd.f32 %v2664_v55, %v2663_v54  ;;  %v2567_v54 = vld [vmem:[%s3521_s7] ss:$0 sm:$0xff] }
 0x40d   :  { %v2287_v37 = vadd.f32 %v2286_v25, %v2272_v32  ;;  %v2250_v58 = vadd.f32 %v3468_v36, %v2249_v56  ;;  %v2273_v59 = vmul.f32 %v3468_v36, %v3468_v36 }
 0x40f   :  { %v2288_v24 = vadd.f32 %v2287_v37, %v2273_v59  ;;  %v2666_v63 = vpop.f32.mrb[92].mxu0 }
 0x410   :  { %v2667_v15 = vpop.f32.mrb[93].mxu0 }
 0x411   :  { %v3473_v0 = vadd.f32 %v2667_v15, %v2666_v63  ;;  %v2669_v7 = vpop.f32.mrb[94].mxu0 }
 0x412   :  { %v2670_v17 = vpop.f32.mrb[95].mxu0 }
 0x413   :  { %v2251_v30 = vadd.f32 %v3473_v0, %v2250_v58  ;;  %v2274_v35 = vmul.f32 %v3473_v0, %v3473_v0  ;;  %v2671_v39 = vadd.f32 %v2670_v17, %v2669_v7 }
 0x415   :  { %v2289_v41 = vadd.f32 %v2288_v24, %v2274_v35  ;;  %v2252_v43 = vadd.f32 %v2671_v39, %v2251_v30  ;;  %v2275_v44 = vmul.f32 %v2671_v39, %v2671_v39 }
 0x417   :  { %v2253_v45 = vrot.slane %v2252_v43, 4  ;;  %v2290_v60 = vadd.f32 %v2289_v41, %v2275_v44 }
 0x419   :  { %v2254_v5 = vadd.f32 %v2253_v45, %v2252_v43  ;;  %v2291_v61 = vrot.slane %v2290_v60, 4 }
 0x41b   :  { %v2255_v62 = vrot.slane %v2254_v5, 2  ;;  %v2292_v4 = vadd.f32 %v2291_v61, %v2290_v60 }
 0x41d   :  { %v2256_v6 = vadd.f32 %v2255_v62, %v2254_v5  ;;  %v2293_v8 = vrot.slane %v2292_v4, 2 }
 0x41f   :  { %v2257_v10 = vrot.slane %v2256_v6, 1  ;;  %v2294_v14 = vadd.f32 %v2293_v8, %v2292_v4 }
 0x421   :  { %v2258_v16 = vadd.f32 %v2257_v10, %v2256_v6  ;;  %v2295_v20 = vrot.slane %v2294_v14, 1 }
 0x423   :  { %v2259_v23 = vmul.f32 0.05, %v2258_v16  ;;  %v2296_v9 = vadd.f32 %v2295_v20, %v2294_v14 }
 0x425   :  { %v2297_v11 = vmul.f32 0.05, %v2296_v9  ;;  %v2298_v29 = vmul.f32 %v2259_v23, %v2259_v23  ;;  %v2316_v31 = vsub.f32 %v2671_v39, %v2259_v23  ;;  %v2304_v33 = vsub.f32 %v3417_v57, %v2259_v23 }
 0x426   :  { %v2305_v18 = vsub.f32 %v3423_v1, %v2259_v23  ;;  %v2306_v40 = vsub.f32 %v3428_v34, %v2259_v23  ;;  %v2307_v22 = vsub.f32 %v3433_v46, %v2259_v23  ;;  %v2308_v27 = vsub.f32 %v3438_v2, %v2259_v23 }
 0x427   :  { %v2299_v38 = vsub.f32 %v2297_v11, %v2298_v29  ;;  %v2309_v28 = vsub.f32 %v3443_v12, %v2259_v23  ;;  %v2310_v21 = vsub.f32 %v3448_v13, %v2259_v23  ;;  %v2311_v49 = vsub.f32 %v3453_v42, %v2259_v23  ;;  %v2566_v42 = vld [vmem:[%s3520_s6] ss:$0 sm:$0xff]  ;;  %s3133_s6 = smov [#allocation11]  }
 0x428   :  { %v2312_v50 = vsub.f32 %v3458_v47, %v2259_v23  ;;  %v2313_v57 = vsub.f32 %v3463_v53, %v2259_v23  ;;  %v2314_v1 = vsub.f32 %v3468_v36, %v2259_v23  ;;  %v2315_v25 = vsub.f32 %v3473_v0, %v2259_v23  ;;  %s2418_s7 = sshll.u32 %s3133_s6, 4  ;;  %s2419_s7 = int_to_ptr.vmem [resolvable:$true] %s2418_s7 }
 0x429   :  { %v2300_v19 = vmax.f32 %v2299_v38, 0.0  ;;  %v2301_v46 = vsub.f32 %v3403_v48, %v2259_v23  ;;  %v2302_v2 = vsub.f32 %v3405_v51, %v2259_v23  ;;  %v2303_v12 = vsub.f32 %v3409_v3, %v2259_v23  ;;  %s3091_s18 = scalar_lea.vmem %s2419_s7, 2048  ;;  %p3096_p5 = scmp.lt.s32.totalorder %s2419_s7, %s2419_s7 }
 0x42a   :  { %p3092_p4 = scmp.ne.s32.totalorder %s2419_s7, %s3091_s18  ;;  %p3097_p6 = scmp.lt.s32.totalorder %s3091_s18, %s3091_s18 }
 0x42b   :  { %v2317_v34 = vadd.f32 1e-05, %v2300_v19 }
 0x42c   :  { %p3098_p7 = por %p3097_p6, %p3096_p5 }
 0x42d   :  { %3001 = vrsqrt.f32 %v2317_v34 }
 0x42e   :  { %p3099_p8 = pnand %p3098_p7, %p3092_p4 }
 0x437   :  { %v3002_v13 = vpop.eup %3001 }
 0x438   :  { %v2334_v47 = vmul.f32 %v3002_v13, %v2316_v31  ;;  %v2319_v26 = vmul.f32 %v3002_v13, %v2301_v46  ;;  %v2320_v52 = vmul.f32 %v3002_v13, %v2302_v2  ;;  %v2321_v53 = vmul.f32 %v3002_v13, %v2303_v12 }
 0x439   :  { %v2322_v55 = vmul.f32 %v3002_v13, %v2304_v33  ;;  %v2323_v56 = vmul.f32 %v3002_v13, %v2305_v18  ;;  %v2324_v48 = vmul.f32 %v3002_v13, %v2306_v40  ;;  %v2325_v32 = vmul.f32 %v3002_v13, %v2307_v22 }
 0x43a   :  { %v2357_v51 = vmul.f32 %v2566_v42, %v2334_v47  ;;  %v2326_v36 = vmul.f32 %v3002_v13, %v2308_v27  ;;  %v2327_v3 = vmul.f32 %v3002_v13, %v2309_v28  ;;  %v2328_v37 = vmul.f32 %v3002_v13, %v2310_v21 }
 0x43b   :  { %v2329_v58 = vmul.f32 %v3002_v13, %v2311_v49  ;;  %v2330_v59 = vmul.f32 %v3002_v13, %v2312_v50  ;;  %v2331_v24 = vmul.f32 %v3002_v13, %v2313_v57  ;;  %v2332_v63 = vmul.f32 %v3002_v13, %v2314_v1 }
 0x43c   :  { %v2380_v15 = vadd.f32 %v2567_v54, %v2357_v51  ;;  %v2333_v0 = vmul.f32 %v3002_v13, %v2315_v25  ;;  %v2342_v7 = vmul.f32 %v2566_v42, %v2319_v26  ;;  %v2343_v17 = vmul.f32 %v2566_v42, %v2320_v52 }
 0x43d   :  { %v2344_v30 = vmul.f32 %v2566_v42, %v2321_v53  ;;  %v2345_v35 = vmul.f32 %v2566_v42, %v2322_v55  ;;  %v2346_v39 = vmul.f32 %v2566_v42, %v2323_v56  ;;  %v2347_v41 = vmul.f32 %v2566_v42, %v2324_v48 }
 0x43e   :  { %v2396_v43 = vmax.f32 %v2380_v15, 0.0  ;;  %v2348_v44 = vmul.f32 %v2566_v42, %v2325_v32  ;;  %v2349_v45 = vmul.f32 %v2566_v42, %v2326_v36  ;;  %v2350_v60 = vmul.f32 %v2566_v42, %v2327_v3 }
 0x43f   :  { %v2351_v5 = vmul.f32 %v2566_v42, %v2328_v37  ;;  %v2352_v61 = vmul.f32 %v2566_v42, %v2329_v58  ;;  %v2353_v62 = vmul.f32 %v2566_v42, %v2330_v59  ;;  %v2354_v4 = vmul.f32 %v2566_v42, %v2331_v24 }
 0x440   :  { %2412 = vst [vmem:[#allocation11 + $0x78] sm:$0xff] %v2396_v43  ;;  %v2355_v6 = vmul.f32 %v2566_v42, %v2332_v63  ;;  %v2356_v8 = vmul.f32 %v2566_v42, %v2333_v0  ;;  %v2365_v10 = vadd.f32 %v2567_v54, %v2342_v7  ;;  %v2366_v14 = vadd.f32 %v2567_v54, %v2343_v17 }
 0x441   :  { %v2367_v16 = vadd.f32 %v2567_v54, %v2344_v30  ;;  %v2368_v20 = vadd.f32 %v2567_v54, %v2345_v35  ;;  %v2369_v23 = vadd.f32 %v2567_v54, %v2346_v39  ;;  %v2370_v9 = vadd.f32 %v2567_v54, %v2347_v41 }
 0x442   :  { %v2371_v11 = vadd.f32 %v2567_v54, %v2348_v44  ;;  %v2372_v29 = vadd.f32 %v2567_v54, %v2349_v45  ;;  %v2373_v31 = vadd.f32 %v2567_v54, %v2350_v60  ;;  %v2374_v33 = vadd.f32 %v2567_v54, %v2351_v5 }
 0x443   :  { %v2375_v18 = vadd.f32 %v2567_v54, %v2352_v61  ;;  %v2376_v38 = vadd.f32 %v2567_v54, %v2353_v62  ;;  %v2377_v40 = vadd.f32 %v2567_v54, %v2354_v4  ;;  %v2378_v22 = vadd.f32 %v2567_v54, %v2355_v6 }
 0x444   :  { %v2379_v27 = vadd.f32 %v2567_v54, %v2356_v8  ;;  %v2381_v28 = vmax.f32 %v2365_v10, 0.0  ;;  %v2382_v21 = vmax.f32 %v2366_v14, 0.0  ;;  %v2383_v49 = vmax.f32 %v2367_v16, 0.0 }
 0x445   :  { %v2384_v50 = vmax.f32 %v2368_v20, 0.0  ;;  %v2385_v19 = vmax.f32 %v2369_v23, 0.0  ;;  %v2386_v57 = vmax.f32 %v2370_v9, 0.0  ;;  %v2387_v1 = vmax.f32 %v2371_v11, 0.0 }
 0x446   :  { %v2388_v25 = vmax.f32 %v2372_v29, 0.0  ;;  %v2389_v34 = vmax.f32 %v2373_v31, 0.0  ;;  %v2390_v46 = vmax.f32 %v2374_v33, 0.0  ;;  %v2391_v2 = vmax.f32 %v2375_v18, 0.0  ;;  %2397 = vst [vmem:[#allocation11] sm:$0xff] %v2381_v28  ;;  %2398 = vst [vmem:[#allocation11 + $0x8] sm:$0xff] %v2382_v21 }
 0x447   :  { %2399 = vst [vmem:[#allocation11 + $0x10] sm:$0xff] %v2383_v49  ;;  %v2392_v12 = vmax.f32 %v2376_v38, 0.0  ;;  %v2393_v13 = vmax.f32 %v2377_v40, 0.0  ;;  %v2394_v42 = vmax.f32 %v2378_v22, 0.0  ;;  %v2395_v47 = vmax.f32 %v2379_v27, 0.0  ;;  %2400 = vst [vmem:[#allocation11 + $0x18] sm:$0xff] %v2384_v50 }
 0x448   :  { %2401 = vst [vmem:[#allocation11 + $0x20] sm:$0xff] %v2385_v19  ;;  %2402 = vst [vmem:[#allocation11 + $0x28] sm:$0xff] %v2386_v57 }
 0x449   :  { %2403 = vst [vmem:[#allocation11 + $0x30] sm:$0xff] %v2387_v1  ;;  %2404 = vst [vmem:[#allocation11 + $0x38] sm:$0xff] %v2388_v25 }
 0x44a   :  { %2405 = vst [vmem:[#allocation11 + $0x40] sm:$0xff] %v2389_v34  ;;  %2406 = vst [vmem:[#allocation11 + $0x48] sm:$0xff] %v2390_v46 }
 0x44b   :  { %2407 = vst [vmem:[#allocation11 + $0x50] sm:$0xff] %v2391_v2  ;;  %2408 = vst [vmem:[#allocation11 + $0x58] sm:$0xff] %v2392_v12 }
 0x44c   :  { %2409 = vst [vmem:[#allocation11 + $0x60] sm:$0xff] %v2393_v13  ;;  %2410 = vst [vmem:[#allocation11 + $0x68] sm:$0xff] %v2394_v42 }
 0x44d   :  { %2411 = vst [vmem:[#allocation11 + $0x70] sm:$0xff] %v2395_v47 }
 0x44e   :  { %3102 = shalt.err (!%p3099_p8)
}
 0x44f   :  { %s3103_s22 = scalar_lea.hbm %s3522_s8, 2048 }
 0x450   :  { %p3104_p9 = scmp.ne.s32.totalorder %s3522_s8, %s3103_s22  ;;  %p3107_p10 = scmp.lt.u32.totalorder %s3103_s22, %s3522_s8 }
 0x452   :  { %p3109_p11 = pnand %p3107_p10, %p3104_p9 }
 0x454   :  { %3112 = shalt.err (!%p3109_p11)
}
 0x455   :  { %2424 = dma.vmem_to_hbm [thread:$0]  %s2419_s7, 2048, %s3522_s8, [#allocation5], %s3122_s15, %s3122_s15, %s3123_s16  }
 0x456   :  { %3119 = dma.done.wait [#allocation5], 2048  }
 0x457   :  { %3120 = vsyncadd [#allocation5], 4294965248 }
 0x458   :  { %2428 = vsyncpa [#allocation4], 1 }
 0x459   :  { %2429 = vsyncpa [#allocation7], 1 }
 0x45a   :  { %2430 = vsyncpa [#allocation10], 1 }
 0x45b   :  { %2431 = vsyncpa [#allocation5], 1 }

</bundles_post_ra>
